<compile_context>
chip_gen: v6e
topology: v6e:2x2x1
jax: 0.10.0
libtpu: 0.0.40
codegen_flags: <defaults>
</compile_context>

<pallas_src>
import jax
import jax.numpy as jnp
from jax import lax
from jax.experimental import pallas as pl
from jax.experimental.pallas import tpu as pltpu

MATMUL_DTYPE = jnp.bfloat16   # MXU operand dtype (accumulation stays f32)
GATE_ORDER = (0, 1, 3, 2)     # PyTorch gate order i,f,g,o -> kernel order i,f,o,g


# -----------------------------------------------------------------------------
# Pallas kernel: fused bidirectional LSTM recurrence + attention + final linear.
# -----------------------------------------------------------------------------
def lstm_attention_kernel(emb_ref,                 # (T*Bp, E)  bf16, rows = t*Bp + b (time-major)
                          wx_ref,                  # (E, 8H)    bf16, cols [i_f,i_b,f_f,f_b,o_f,o_b,g_f,g_b]
                          wh_ref,                  # (2H, 8H)   bf16, block-structured (h_f->fwd cols, h_b->bwd cols)
                          b_ref,                   # (1, 8H)    f32 fused (ih+hh) biases, same column order
                          w1f_ref, w1b_ref,        # (H, H) bf16 each  attention Linear 1, split per direction
                          b1_ref,                  # (1, H)     f32
                          w2_ref, b2_ref,          # (1, H), (1, 1) f32   attention Linear 2
                          wfcf_ref, wfcb_ref,      # (H, C) bf16 each     final fc, split per direction
                          bfc_ref,                 # (1, C)     f32
                          out_ref,                 # (Bp, C)    f32
                          xg_scr,                  # (T*Bp, 8H) f32 scratch: hoisted input->gate contributions
                          hf_scr,                  # (T*Bp, H)  f32 scratch: forward hidden at output-time rows
                          hb_scr):                 # (T*Bp, H)  f32 scratch: backward hidden at output-time rows
    f32 = jnp.float32
    TB, _ = emb_ref.shape
    Bp = out_ref.shape[0]
    T = TB // Bp
    H = hf_scr.shape[1]
    H2 = 2 * H
    H8 = 8 * H

    # ---- Phase 1: hoisted input->gate matmul (both directions, all T steps) ----
    # Written to VMEM scratch so the (T*Bp, 8H) intermediate is not live in vregs
    # across the unrolled recurrence.
    xg_scr[...] = (jnp.dot(emb_ref[...], wx_ref[...],
                           preferred_element_type=f32) + b_ref[...])

    # Within each 2H-wide gate block the first H lanes belong to the forward
    # direction.  Hoisted out of the loop.
    lane = lax.broadcasted_iota(jnp.int32, (Bp, H8), 1)
    is_fwd_lane = (lane % H2) < H

    wh = wh_ref[...]                              # hoist recurrent weights once (bf16)

    h = jnp.zeros((Bp, H2), f32)                  # [h_fwd | h_bwd]
    c = jnp.zeros((Bp, H2), f32)

    # Fused bidirectional recurrence: ONE (Bp,2H)@(2H,8H) matmul per time step.
    # Statically unrolled (T is a small Python int) -> static, sublane-aligned slices.
    for s in range(T):
        r = T - 1 - s                             # backward direction consumes x_{T-1-s}
        gin = jnp.where(is_fwd_lane,
                        xg_scr[s * Bp:(s + 1) * Bp, :],
                        xg_scr[r * Bp:(r + 1) * Bp, :])                 # (Bp, 8H)
        gates = gin + jnp.dot(h.astype(MATMUL_DTYPE), wh,
                              preferred_element_type=f32)               # (Bp, 8H)
        # Column order [i | f | o | g] -> one contiguous sigmoid slab, one tanh slab.
        sig = jax.nn.sigmoid(gates[:, 0:3 * H2])
        g_g = jnp.tanh(gates[:, 3 * H2:4 * H2])
        i_g = sig[:, 0:H2]
        f_g = sig[:, H2:2 * H2]
        o_g = sig[:, 2 * H2:3 * H2]
        c = f_g * c + i_g * g_g
        h = o_g * jnp.tanh(c)
        # Forward half belongs to output position s; backward half to position T-1-s.
        # Each store spans the full lane width of its (T*Bp, H) scratch.
        hf_scr[s * Bp:(s + 1) * Bp, :] = h[:, 0:H]
        hb_scr[r * Bp:(r + 1) * Bp, :] = h[:, H:H2]

    # ---- Phase 2: attention scores over all T*Bp rows (fused matmuls) ----
    hf = hf_scr[...]                                                    # (T*Bp, H)
    hb = hb_scr[...]                                                    # (T*Bp, H)
    a1 = jnp.tanh(
        jnp.dot(hf.astype(MATMUL_DTYPE), w1f_ref[...], preferred_element_type=f32)
        + jnp.dot(hb.astype(MATMUL_DTYPE), w1b_ref[...], preferred_element_type=f32)
        + b1_ref[...])                                                  # (T*Bp, H)
    sc = jnp.sum(a1 * w2_ref[...], axis=-1, keepdims=True) + b2_ref[...]  # (T*Bp, 1)

    # ---- Phase 3: per-batch-stable softmax over time + weighted context ----
    # Per-batch max (not global) avoids exp underflow -> Inf/NaN for low-scoring rows.
    m = sc[0:Bp, :]
    for t in range(1, T):
        m = jnp.maximum(m, sc[t * Bp:(t + 1) * Bp, :])                  # (Bp, 1)

    den = jnp.zeros((Bp, 1), f32)
    num_f = jnp.zeros((Bp, H), f32)
    num_b = jnp.zeros((Bp, H), f32)
    for t in range(T):
        e_t = jnp.exp(sc[t * Bp:(t + 1) * Bp, :] - m)                   # (Bp, 1)
        den = den + e_t
        num_f = num_f + e_t * hf[t * Bp:(t + 1) * Bp, :]
        num_b = num_b + e_t * hb[t * Bp:(t + 1) * Bp, :]
    inv = pl.reciprocal(den, approx=True)                               # EUP slot, ~free
    ctx_f = num_f * inv                                                 # (Bp, H)
    ctx_b = num_b * inv                                                 # (Bp, H)

    # ---- Phase 4: final linear ----
    out_ref[...] = (
        jnp.dot(ctx_f.astype(MATMUL_DTYPE), wfcf_ref[...], preferred_element_type=f32)
        + jnp.dot(ctx_b.astype(MATMUL_DTYPE), wfcb_ref[...], preferred_element_type=f32)
        + bfc_ref[...])


# -----------------------------------------------------------------------------
# Wrapper: embedding lookup, batch padding, fused weight re-layout, pallas_call.
# -----------------------------------------------------------------------------
def lstm_attention_forward(x, p):
    f32 = jnp.float32
    mm = MATMUL_DTYPE
    H = p["hidden_dim"]
    emb_table = p["embedding"]                        # (V, E)
    B, T = x.shape
    E = emb_table.shape[1]
    C = p["fc_w"].shape[0]
    H2, H8 = 2 * H, 8 * H

    # Pad batch to a multiple of the f32 sublane count (>= 8) so every per-step row
    # block is sublane-aligned; padded rows (zero embeddings) are dropped at the end.
    Bp = max(8, ((B + 7) // 8) * 8)

    # Embedding gather is JAX glue; build time-major rows t*Bp + b, passed ONCE.
    emb = jnp.take(emb_table, x, axis=0).astype(f32)                  # (B, T, E)
    emb_tb = jnp.transpose(emb, (1, 0, 2))                            # (T, B, E)
    emb_tb = jnp.pad(emb_tb, ((0, 0), (0, Bp - B), (0, 0)))           # (T, Bp, E)
    emb_flat = emb_tb.reshape(T * Bp, E).astype(mm)                   # (T*Bp, E) bf16

    # Input->gate weights for BOTH directions share the same E input rows:
    # columns [i_f,i_b, f_f,f_b, o_f,o_b, g_f,g_b]  (no structural zeros).
    def fuse_input_w(w_f, w_b):                   # (4H, E) PyTorch -> (E, 8H)
        cols = []
        for g in GATE_ORDER:
            cols.append(w_f[g * H:(g + 1) * H, :].T.astype(f32))
            cols.append(w_b[g * H:(g + 1) * H, :].T.astype(f32))
        return jnp.concatenate(cols, axis=1)

    # Recurrent weights: block-structured (h_f only feeds fwd gate columns, h_b only
    # feeds bwd columns).  Kept fused for tiny H (see TODO at top for H >= 128).
    def fuse_hidden_w(w_f, w_b):                  # (4H, H) PyTorch -> (2H, 8H)
        z = jnp.zeros((H, H), f32)
        cols = []
        for g in GATE_ORDER:
            cols.append(jnp.concatenate([w_f[g * H:(g + 1) * H, :].T.astype(f32), z], axis=0))
            cols.append(jnp.concatenate([z, w_b[g * H:(g + 1) * H, :].T.astype(f32)], axis=0))
        return jnp.concatenate(cols, axis=1)

    wx = fuse_input_w(p["w_ih_f"], p["w_ih_b"]).astype(mm)            # (E, 8H)
    wh = fuse_hidden_w(p["w_hh_f"], p["w_hh_b"]).astype(mm)           # (2H, 8H)

    bfw = (p["b_ih_f"] + p["b_hh_f"]).astype(f32)                     # (4H,)
    bbw = (p["b_ih_b"] + p["b_hh_b"]).astype(f32)
    b_full = jnp.concatenate(
        [jnp.concatenate([bfw[g * H:(g + 1) * H], bbw[g * H:(g + 1) * H]])
         for g in GATE_ORDER]).reshape(1, H8)                         # (1, 8H) f32

    # Attention / fc weights split per direction (rows of lstm_out = [h_f | h_b]).
    w1f = p["attn_w1"][:, 0:H].T.astype(mm)                           # (H, H)
    w1b = p["attn_w1"][:, H:H2].T.astype(mm)                          # (H, H)
    b1 = p["attn_b1"].reshape(1, H).astype(f32)
    w2 = p["attn_w2"].reshape(1, H).astype(f32)
    b2 = p["attn_b2"].reshape(1, 1).astype(f32)
    wfcf = p["fc_w"][:, 0:H].T.astype(mm)                             # (H, C)
    wfcb = p["fc_w"][:, H:H2].T.astype(mm)                            # (H, C)
    bfc = p["fc_b"].reshape(1, C).astype(f32)

    inputs = (emb_flat, wx, wh, b_full, w1f, w1b, b1, w2, b2, wfcf, wfcb, bfc)

    out_pad = pl.pallas_call(
        lstm_attention_kernel,
        out_shape=jax.ShapeDtypeStruct((Bp, C), f32),
        in_specs=[pl.BlockSpec(memory_space=pltpu.MemorySpace.VMEM)] * len(inputs),
        out_specs=pl.BlockSpec(memory_space=pltpu.MemorySpace.VMEM),
        scratch_shapes=[pltpu.VMEM((T * Bp, H8), f32),   # xg_scr
                        pltpu.VMEM((T * Bp, H), f32),    # hf_scr
                        pltpu.VMEM((T * Bp, H), f32)],   # hb_scr
        compiler_params=pltpu.CompilerParams(
            # Explicit scoped-VMEM budget; tiny problem, well under 64 MiB physical
            # on v7x and the 16/32 MiB defaults on v5e/v6e.
            vmem_limit_bytes=32 * 1024 * 1024),
    )(*inputs)

    return out_pad[:B]


# -----------------------------------------------------------------------------
# Pure-JAX f32 reference (mirrors the PyTorch forward exactly) for validation.
# -----------------------------------------------------------------------------
def reference_forward(x, p):
    H = p["hidden_dim"]
    emb = p["embedding"][x]                          # (B, T, E)

    def lstm_dir(seq, w_ih, w_hh, b_ih, b_hh):
        B = seq.shape[0]

        def step(carry, x_t):
            h, c = carry
            g = x_t @ w_ih.T + h @ w_hh.T + b_ih + b_hh
            i = jax.nn.sigmoid(g[:, :H])
            f = jax.nn.sigmoid(g[:, H:2 * H])
            gg = jnp.tanh(g[:, 2 * H:3 * H])
            o = jax.nn.sigmoid(g[:, 3 * H:])
            c = f * c + i * gg
            h = o * jnp.tanh(c)
            return (h, c), h

        init = (jnp.zeros((B, H), jnp.float32), jnp.zeros((B, H), jnp.float32))
        _, hs = lax.scan(step, init, jnp.transpose(seq, (1, 0, 2)))
        return jnp.transpose(hs, (1, 0, 2))          # (B, T, H)

    hf = lstm_dir(emb, p["w_ih_f"], p["w_hh_f"], p["b_ih_f"], p["b_hh_f"])
    hb = lstm_dir(emb[:, ::-1], p["w_ih_b"], p["w_hh_b"], p["b_ih_b"], p["b_hh_b"])[:, ::-1]
    lstm_out = jnp.concatenate([hf, hb], axis=-1)    # (B, T, 2H)

    a = jnp.tanh(lstm_out @ p["attn_w1"].T + p["attn_b1"])
    sc = a @ p["attn_w2"].T + p["attn_b2"]           # (B, T, 1)
    w = jax.nn.softmax(sc, axis=1)
    ctx = jnp.sum(w * lstm_out, axis=1)              # (B, 2H)
    return ctx @ p["fc_w"].T + p["fc_b"]


def init_params(key, vocab_size, embedding_dim, hidden_dim, num_classes):
    ks = jax.random.split(key, 16)                   # distinct keys for every tensor
    k = 1.0 / jnp.sqrt(hidden_dim)
    u = lambda kk, shape, s: jax.random.uniform(kk, shape, jnp.float32, -s, s)
    H, E, V, C = hidden_dim, embedding_dim, vocab_size, num_classes
    return {
        "hidden_dim": H,
        "embedding": jax.random.normal(ks[0], (V, E), jnp.float32),
        "w_ih_f": u(ks[1], (4 * H, E), k), "w_hh_f": u(ks[2], (4 * H, H), k),
        "b_ih_f": u(ks[3], (4 * H,), k), "b_hh_f": u(ks[4], (4 * H,), k),
        "w_ih_b": u(ks[5], (4 * H, E), k), "w_hh_b": u(ks[6], (4 * H, H), k),
        "b_ih_b": u(ks[7], (4 * H,), k), "b_hh_b": u(ks[8], (4 * H,), k),
        "attn_w1": u(ks[9], (H, 2 * H), k), "attn_b1": u(ks[10], (H,), k),
        "attn_w2": u(ks[11], (1, H), k), "attn_b2": u(ks[12], (1,), k),
        "fc_w": u(ks[13], (C, 2 * H), k), "fc_b": u(ks[14], (C,), k),
    }


if __name__ == "__main__":
    B, T = 2, 8
    vocab_size, embedding_dim, hidden_dim, num_classes = 50, 32, 32, 4

    key = jax.random.PRNGKey(0)
    k_x, k_p = jax.random.split(key)
    x = jax.random.randint(k_x, (B, T), 0, vocab_size, dtype=jnp.int32)
    params = init_params(k_p, vocab_size, embedding_dim, hidden_dim, num_classes)

    out = jax.block_until_ready(lstm_attention_forward(x, params))
    ref = jax.block_until_ready(reference_forward(x, params))

    assert out.shape == (B, num_classes)
    # Tolerance accounts for bf16 MXU operands in the kernel vs the f32 reference
    # (error accumulates over the T recurrence steps); structural bugs produce O(0.1+) errors.
    assert jnp.allclose(out, ref, atol=3e-2, rtol=3e-2), (out, ref)
    print("KERNEL_OK")
</pallas_src>

<mosaic_0001>
module attributes {stable_mosaic.version = 11 : i64} {
  func.func @lstm_attention_kernel(%arg0: memref<64x32xbf16, #tpu.memory_space<vmem>>, %arg1: memref<32x256xbf16, #tpu.memory_space<vmem>>, %arg2: memref<64x256xbf16, #tpu.memory_space<vmem>>, %arg3: memref<1x256xf32, #tpu.memory_space<vmem>>, %arg4: memref<32x32xbf16, #tpu.memory_space<vmem>>, %arg5: memref<32x32xbf16, #tpu.memory_space<vmem>>, %arg6: memref<1x32xf32, #tpu.memory_space<vmem>>, %arg7: memref<1x32xf32, #tpu.memory_space<vmem>>, %arg8: memref<1x1xf32, #tpu.memory_space<vmem>>, %arg9: memref<32x4xbf16, #tpu.memory_space<vmem>>, %arg10: memref<32x4xbf16, #tpu.memory_space<vmem>>, %arg11: memref<1x4xf32, #tpu.memory_space<vmem>>, %arg12: memref<8x4xf32, #tpu.memory_space<vmem>>, %arg13: memref<64x256xf32, #tpu.memory_space<vmem>>, %arg14: memref<64x32xf32, #tpu.memory_space<vmem>>, %arg15: memref<64x32xf32, #tpu.memory_space<vmem>>) attributes {dimension_semantics = [], scalar_prefetch = 0 : i64, scratch_operands = 3 : i64, tpu.core_type = #tpu.core_type<tc>} {
    %c0 = arith.constant 0 : index
    %c0_0 = arith.constant 0 : index
    %0 = vector.load %arg0[%c0, %c0_0] : memref<64x32xbf16, #tpu.memory_space<vmem>>, vector<64x32xbf16>
    %c0_1 = arith.constant 0 : index
    %c0_2 = arith.constant 0 : index
    %1 = vector.load %arg1[%c0_1, %c0_2] : memref<32x256xbf16, #tpu.memory_space<vmem>>, vector<32x256xbf16>
    %cst = arith.constant dense<0.000000e+00> : vector<64x256xf32>
    %2 = tpu.matmul %0, %1, %cst {dimension_numbers = #tpu.dot_dimension_numbers<[1], [0], [0], [1], [0, 0, 1, 1], [], []>} : vector<64x32xbf16>, vector<32x256xbf16>, vector<64x256xf32> -> vector<64x256xf32>
    %c0_3 = arith.constant 0 : index
    %c0_4 = arith.constant 0 : index
    %3 = vector.load %arg3[%c0_3, %c0_4] : memref<1x256xf32, #tpu.memory_space<vmem>>, vector<1x256xf32>
    %4 = vector.broadcast %3 : vector<1x256xf32> to vector<64x256xf32>
    %5 = arith.addf %2, %4 : vector<64x256xf32>
    %c0_5 = arith.constant 0 : index
    %c0_6 = arith.constant 0 : index
    %6 = vector.load %arg13[%c0_5, %c0_6] : memref<64x256xf32, #tpu.memory_space<vmem>>, vector<64x256xf32>
    tpu.vector_store %arg13[%c0_5, %c0_6], %5 {strides = array<i32>} : memref<64x256xf32, #tpu.memory_space<vmem>>, vector<64x256xf32>,
    %7 = tpu.iota {dimensions = array<i32: 1>} : vector<8x256xi32>
    %c64_i32 = arith.constant 64 : i32
    %c0_i32 = arith.constant 0 : i32
    %8 = arith.cmpi eq, %c64_i32, %c0_i32 : i32
    %c1_i32 = arith.constant 1 : i32
    %9 = arith.select %8, %c1_i32, %c64_i32 : i32
    %10 = vector.broadcast %9 : i32 to vector<8x256xi32>
    %11 = arith.remsi %7, %10 : vector<8x256xi32>
    %c0_i32_7 = arith.constant 0 : i32
    %12 = vector.broadcast %c0_i32_7 : i32 to vector<8x256xi32>
    %13 = arith.cmpi ne, %11, %12 : vector<8x256xi32>
    %c0_i32_8 = arith.constant 0 : i32
    %14 = vector.broadcast %c0_i32_8 : i32 to vector<8x256xi32>
    %15 = arith.cmpi slt, %11, %14 : vector<8x256xi32>
    %c0_i32_9 = arith.constant 0 : i32
    %16 = arith.cmpi slt, %9, %c0_i32_9 : i32
    %17 = vector.broadcast %16 : i1 to vector<8x256xi1>
    %18 = vector.broadcast %17 : vector<8x256xi1> to vector<8x256xi1>
    %19 = arith.xori %15, %18 : vector<8x256xi1>
    %20 = arith.andi %19, %13 : vector<8x256xi1>
    %21 = vector.broadcast %9 : i32 to vector<8x256xi32>
    %22 = arith.addi %11, %21 : vector<8x256xi32>
    %23 = arith.select %20, %22, %11 : vector<8x256xi1>, vector<8x256xi32>
    %c32_i32 = arith.constant 32 : i32
    %24 = vector.broadcast %c32_i32 : i32 to vector<8x256xi32>
    %25 = arith.cmpi slt, %23, %24 : vector<8x256xi32>
    %c0_10 = arith.constant 0 : index
    %c0_11 = arith.constant 0 : index
    %26 = vector.load %arg2[%c0_10, %c0_11] : memref<64x256xbf16, #tpu.memory_space<vmem>>, vector<64x256xbf16>
    %cst_12 = arith.constant 0.000000e+00 : f32
    %27 = vector.broadcast %cst_12 : f32 to vector<8x64xf32>
    %cst_13 = arith.constant 0.000000e+00 : f32
    %28 = vector.broadcast %cst_13 : f32 to vector<8x64xf32>
    %c0_14 = arith.constant 0 : index
    %c0_15 = arith.constant 0 : index
    %29 = vector.load %arg13[%c0_14, %c0_15] : memref<64x256xf32, #tpu.memory_space<vmem>>, vector<8x256xf32>
    %c56 = arith.constant 56 : index
    %c0_16 = arith.constant 0 : index
    %30 = vector.load %arg13[%c56, %c0_16] : memref<64x256xf32, #tpu.memory_space<vmem>>, vector<8x256xf32>
    %31 = arith.select %25, %29, %30 : vector<8x256xi1>, vector<8x256xf32>
    %32 = arith.truncf %27 : vector<8x64xf32> to vector<8x64xbf16>
    %cst_17 = arith.constant dense<0.000000e+00> : vector<8x256xf32>
    %33 = tpu.matmul %32, %26, %cst_17 {dimension_numbers = #tpu.dot_dimension_numbers<[1], [0], [0], [1], [0, 0, 1, 1], [], []>} : vector<8x64xbf16>, vector<64x256xbf16>, vector<8x256xf32> -> vector<8x256xf32>
    %34 = arith.addf %31, %33 : vector<8x256xf32>
    %35 = vector.extract_strided_slice %34 {offsets = [0, 0], sizes = [8, 192], strides = [1, 1]} : vector<8x256xf32> to vector<8x192xf32>
    %36 = arith.negf %35 : vector<8x192xf32>
    %37 = math.exp %36 : vector<8x192xf32>
    %cst_18 = arith.constant 1.000000e+00 : f32
    %38 = vector.broadcast %cst_18 : f32 to vector<8x192xf32>
    %39 = arith.addf %38, %37 : vector<8x192xf32>
    %40 = arith.divf %38, %39 : vector<8x192xf32>
    %41 = vector.extract_strided_slice %34 {offsets = [0, 192], sizes = [8, 64], strides = [1, 1]} : vector<8x256xf32> to vector<8x64xf32>
    %42 = math.tanh %41 : vector<8x64xf32>
    %43 = vector.extract_strided_slice %40 {offsets = [0, 0], sizes = [8, 64], strides = [1, 1]} : vector<8x192xf32> to vector<8x64xf32>
    %44 = vector.extract_strided_slice %40 {offsets = [0, 64], sizes = [8, 64], strides = [1, 1]} : vector<8x192xf32> to vector<8x64xf32>
    %45 = vector.extract_strided_slice %40 {offsets = [0, 128], sizes = [8, 64], strides = [1, 1]} : vector<8x192xf32> to vector<8x64xf32>
    %46 = arith.mulf %44, %28 : vector<8x64xf32>
    %47 = arith.mulf %43, %42 : vector<8x64xf32>
    %48 = arith.addf %46, %47 : vector<8x64xf32>
    %49 = math.tanh %48 : vector<8x64xf32>
    %50 = arith.mulf %45, %49 : vector<8x64xf32>
    %51 = vector.extract_strided_slice %50 {offsets = [0, 0], sizes = [8, 32], strides = [1, 1]} : vector<8x64xf32> to vector<8x32xf32>
    %c0_19 = arith.constant 0 : index
    %c0_20 = arith.constant 0 : index
    %52 = vector.load %arg14[%c0_19, %c0_20] : memref<64x32xf32, #tpu.memory_space<vmem>>, vector<8x32xf32>
    tpu.vector_store %arg14[%c0_19, %c0_20], %51 {strides = array<i32>} : memref<64x32xf32, #tpu.memory_space<vmem>>, vector<8x32xf32>,
    %53 = vector.extract_strided_slice %50 {offsets = [0, 32], sizes = [8, 32], strides = [1, 1]} : vector<8x64xf32> to vector<8x32xf32>
    %c56_21 = arith.constant 56 : index
    %c0_22 = arith.constant 0 : index
    %54 = vector.load %arg15[%c56_21, %c0_22] : memref<64x32xf32, #tpu.memory_space<vmem>>, vector<8x32xf32>
    tpu.vector_store %arg15[%c56_21, %c0_22], %53 {strides = array<i32>} : memref<64x32xf32, #tpu.memory_space<vmem>>, vector<8x32xf32>,
    %c8 = arith.constant 8 : index
    %c0_23 = arith.constant 0 : index
    %55 = vector.load %arg13[%c8, %c0_23] : memref<64x256xf32, #tpu.memory_space<vmem>>, vector<8x256xf32>
    %c48 = arith.constant 48 : index
    %c0_24 = arith.constant 0 : index
    %56 = vector.load %arg13[%c48, %c0_24] : memref<64x256xf32, #tpu.memory_space<vmem>>, vector<8x256xf32>
    %57 = arith.select %25, %55, %56 : vector<8x256xi1>, vector<8x256xf32>
    %58 = arith.truncf %50 : vector<8x64xf32> to vector<8x64xbf16>
    %cst_25 = arith.constant dense<0.000000e+00> : vector<8x256xf32>
    %59 = tpu.matmul %58, %26, %cst_25 {dimension_numbers = #tpu.dot_dimension_numbers<[1], [0], [0], [1], [0, 0, 1, 1], [], []>} : vector<8x64xbf16>, vector<64x256xbf16>, vector<8x256xf32> -> vector<8x256xf32>
    %60 = arith.addf %57, %59 : vector<8x256xf32>
    %61 = vector.extract_strided_slice %60 {offsets = [0, 0], sizes = [8, 192], strides = [1, 1]} : vector<8x256xf32> to vector<8x192xf32>
    %62 = arith.negf %61 : vector<8x192xf32>
    %63 = math.exp %62 : vector<8x192xf32>
    %cst_26 = arith.constant 1.000000e+00 : f32
    %64 = vector.broadcast %cst_26 : f32 to vector<8x192xf32>
    %65 = arith.addf %64, %63 : vector<8x192xf32>
    %66 = arith.divf %64, %65 : vector<8x192xf32>
    %67 = vector.extract_strided_slice %60 {offsets = [0, 192], sizes = [8, 64], strides = [1, 1]} : vector<8x256xf32> to vector<8x64xf32>
    %68 = math.tanh %67 : vector<8x64xf32>
    %69 = vector.extract_strided_slice %66 {offsets = [0, 0], sizes = [8, 64], strides = [1, 1]} : vector<8x192xf32> to vector<8x64xf32>
    %70 = vector.extract_strided_slice %66 {offsets = [0, 64], sizes = [8, 64], strides = [1, 1]} : vector<8x192xf32> to vector<8x64xf32>
    %71 = vector.extract_strided_slice %66 {offsets = [0, 128], sizes = [8, 64], strides = [1, 1]} : vector<8x192xf32> to vector<8x64xf32>
    %72 = arith.mulf %70, %48 : vector<8x64xf32>
    %73 = arith.mulf %69, %68 : vector<8x64xf32>
    %74 = arith.addf %72, %73 : vector<8x64xf32>
    %75 = math.tanh %74 : vector<8x64xf32>
    %76 = arith.mulf %71, %75 : vector<8x64xf32>
    %77 = vector.extract_strided_slice %76 {offsets = [0, 0], sizes = [8, 32], strides = [1, 1]} : vector<8x64xf32> to vector<8x32xf32>
    %c8_27 = arith.constant 8 : index
    %c0_28 = arith.constant 0 : index
    %78 = vector.load %arg14[%c8_27, %c0_28] : memref<64x32xf32, #tpu.memory_space<vmem>>, vector<8x32xf32>
    tpu.vector_store %arg14[%c8_27, %c0_28], %77 {strides = array<i32>} : memref<64x32xf32, #tpu.memory_space<vmem>>, vector<8x32xf32>,
    %79 = vector.extract_strided_slice %76 {offsets = [0, 32], sizes = [8, 32], strides = [1, 1]} : vector<8x64xf32> to vector<8x32xf32>
    %c48_29 = arith.constant 48 : index
    %c0_30 = arith.constant 0 : index
    %80 = vector.load %arg15[%c48_29, %c0_30] : memref<64x32xf32, #tpu.memory_space<vmem>>, vector<8x32xf32>
    tpu.vector_store %arg15[%c48_29, %c0_30], %79 {strides = array<i32>} : memref<64x32xf32, #tpu.memory_space<vmem>>, vector<8x32xf32>,
    %c16 = arith.constant 16 : index
    %c0_31 = arith.constant 0 : index
    %81 = vector.load %arg13[%c16, %c0_31] : memref<64x256xf32, #tpu.memory_space<vmem>>, vector<8x256xf32>
    %c40 = arith.constant 40 : index
    %c0_32 = arith.constant 0 : index
    %82 = vector.load %arg13[%c40, %c0_32] : memref<64x256xf32, #tpu.memory_space<vmem>>, vector<8x256xf32>
    %83 = arith.select %25, %81, %82 : vector<8x256xi1>, vector<8x256xf32>
    %84 = arith.truncf %76 : vector<8x64xf32> to vector<8x64xbf16>
    %cst_33 = arith.constant dense<0.000000e+00> : vector<8x256xf32>
    %85 = tpu.matmul %84, %26, %cst_33 {dimension_numbers = #tpu.dot_dimension_numbers<[1], [0], [0], [1], [0, 0, 1, 1], [], []>} : vector<8x64xbf16>, vector<64x256xbf16>, vector<8x256xf32> -> vector<8x256xf32>
    %86 = arith.addf %83, %85 : vector<8x256xf32>
    %87 = vector.extract_strided_slice %86 {offsets = [0, 0], sizes = [8, 192], strides = [1, 1]} : vector<8x256xf32> to vector<8x192xf32>
    %88 = arith.negf %87 : vector<8x192xf32>
    %89 = math.exp %88 : vector<8x192xf32>
    %cst_34 = arith.constant 1.000000e+00 : f32
    %90 = vector.broadcast %cst_34 : f32 to vector<8x192xf32>
    %91 = arith.addf %90, %89 : vector<8x192xf32>
    %92 = arith.divf %90, %91 : vector<8x192xf32>
    %93 = vector.extract_strided_slice %86 {offsets = [0, 192], sizes = [8, 64], strides = [1, 1]} : vector<8x256xf32> to vector<8x64xf32>
    %94 = math.tanh %93 : vector<8x64xf32>
    %95 = vector.extract_strided_slice %92 {offsets = [0, 0], sizes = [8, 64], strides = [1, 1]} : vector<8x192xf32> to vector<8x64xf32>
    %96 = vector.extract_strided_slice %92 {offsets = [0, 64], sizes = [8, 64], strides = [1, 1]} : vector<8x192xf32> to vector<8x64xf32>
    %97 = vector.extract_strided_slice %92 {offsets = [0, 128], sizes = [8, 64], strides = [1, 1]} : vector<8x192xf32> to vector<8x64xf32>
    %98 = arith.mulf %96, %74 : vector<8x64xf32>
    %99 = arith.mulf %95, %94 : vector<8x64xf32>
    %100 = arith.addf %98, %99 : vector<8x64xf32>
    %101 = math.tanh %100 : vector<8x64xf32>
    %102 = arith.mulf %97, %101 : vector<8x64xf32>
    %103 = vector.extract_strided_slice %102 {offsets = [0, 0], sizes = [8, 32], strides = [1, 1]} : vector<8x64xf32> to vector<8x32xf32>
    %c16_35 = arith.constant 16 : index
    %c0_36 = arith.constant 0 : index
    %104 = vector.load %arg14[%c16_35, %c0_36] : memref<64x32xf32, #tpu.memory_space<vmem>>, vector<8x32xf32>
    tpu.vector_store %arg14[%c16_35, %c0_36], %103 {strides = array<i32>} : memref<64x32xf32, #tpu.memory_space<vmem>>, vector<8x32xf32>,
    %105 = vector.extract_strided_slice %102 {offsets = [0, 32], sizes = [8, 32], strides = [1, 1]} : vector<8x64xf32> to vector<8x32xf32>
    %c40_37 = arith.constant 40 : index
    %c0_38 = arith.constant 0 : index
    %106 = vector.load %arg15[%c40_37, %c0_38] : memref<64x32xf32, #tpu.memory_space<vmem>>, vector<8x32xf32>
    tpu.vector_store %arg15[%c40_37, %c0_38], %105 {strides = array<i32>} : memref<64x32xf32, #tpu.memory_space<vmem>>, vector<8x32xf32>,
    %c24 = arith.constant 24 : index
    %c0_39 = arith.constant 0 : index
    %107 = vector.load %arg13[%c24, %c0_39] : memref<64x256xf32, #tpu.memory_space<vmem>>, vector<8x256xf32>
    %c32 = arith.constant 32 : index
    %c0_40 = arith.constant 0 : index
    %108 = vector.load %arg13[%c32, %c0_40] : memref<64x256xf32, #tpu.memory_space<vmem>>, vector<8x256xf32>
    %109 = arith.select %25, %107, %108 : vector<8x256xi1>, vector<8x256xf32>
    %110 = arith.truncf %102 : vector<8x64xf32> to vector<8x64xbf16>
    %cst_41 = arith.constant dense<0.000000e+00> : vector<8x256xf32>
    %111 = tpu.matmul %110, %26, %cst_41 {dimension_numbers = #tpu.dot_dimension_numbers<[1], [0], [0], [1], [0, 0, 1, 1], [], []>} : vector<8x64xbf16>, vector<64x256xbf16>, vector<8x256xf32> -> vector<8x256xf32>
    %112 = arith.addf %109, %111 : vector<8x256xf32>
    %113 = vector.extract_strided_slice %112 {offsets = [0, 0], sizes = [8, 192], strides = [1, 1]} : vector<8x256xf32> to vector<8x192xf32>
    %114 = arith.negf %113 : vector<8x192xf32>
    %115 = math.exp %114 : vector<8x192xf32>
    %cst_42 = arith.constant 1.000000e+00 : f32
    %116 = vector.broadcast %cst_42 : f32 to vector<8x192xf32>
    %117 = arith.addf %116, %115 : vector<8x192xf32>
    %118 = arith.divf %116, %117 : vector<8x192xf32>
    %119 = vector.extract_strided_slice %112 {offsets = [0, 192], sizes = [8, 64], strides = [1, 1]} : vector<8x256xf32> to vector<8x64xf32>
    %120 = math.tanh %119 : vector<8x64xf32>
    %121 = vector.extract_strided_slice %118 {offsets = [0, 0], sizes = [8, 64], strides = [1, 1]} : vector<8x192xf32> to vector<8x64xf32>
    %122 = vector.extract_strided_slice %118 {offsets = [0, 64], sizes = [8, 64], strides = [1, 1]} : vector<8x192xf32> to vector<8x64xf32>
    %123 = vector.extract_strided_slice %118 {offsets = [0, 128], sizes = [8, 64], strides = [1, 1]} : vector<8x192xf32> to vector<8x64xf32>
    %124 = arith.mulf %122, %100 : vector<8x64xf32>
    %125 = arith.mulf %121, %120 : vector<8x64xf32>
    %126 = arith.addf %124, %125 : vector<8x64xf32>
    %127 = math.tanh %126 : vector<8x64xf32>
    %128 = arith.mulf %123, %127 : vector<8x64xf32>
    %129 = vector.extract_strided_slice %128 {offsets = [0, 0], sizes = [8, 32], strides = [1, 1]} : vector<8x64xf32> to vector<8x32xf32>
    %c24_43 = arith.constant 24 : index
    %c0_44 = arith.constant 0 : index
    %130 = vector.load %arg14[%c24_43, %c0_44] : memref<64x32xf32, #tpu.memory_space<vmem>>, vector<8x32xf32>
    tpu.vector_store %arg14[%c24_43, %c0_44], %129 {strides = array<i32>} : memref<64x32xf32, #tpu.memory_space<vmem>>, vector<8x32xf32>,
    %131 = vector.extract_strided_slice %128 {offsets = [0, 32], sizes = [8, 32], strides = [1, 1]} : vector<8x64xf32> to vector<8x32xf32>
    %c32_45 = arith.constant 32 : index
    %c0_46 = arith.constant 0 : index
    %132 = vector.load %arg15[%c32_45, %c0_46] : memref<64x32xf32, #tpu.memory_space<vmem>>, vector<8x32xf32>
    tpu.vector_store %arg15[%c32_45, %c0_46], %131 {strides = array<i32>} : memref<64x32xf32, #tpu.memory_space<vmem>>, vector<8x32xf32>,
    %c32_47 = arith.constant 32 : index
    %c0_48 = arith.constant 0 : index
    %133 = vector.load %arg13[%c32_47, %c0_48] : memref<64x256xf32, #tpu.memory_space<vmem>>, vector<8x256xf32>
    %c24_49 = arith.constant 24 : index
    %c0_50 = arith.constant 0 : index
    %134 = vector.load %arg13[%c24_49, %c0_50] : memref<64x256xf32, #tpu.memory_space<vmem>>, vector<8x256xf32>
    %135 = arith.select %25, %133, %134 : vector<8x256xi1>, vector<8x256xf32>
    %136 = arith.truncf %128 : vector<8x64xf32> to vector<8x64xbf16>
    %cst_51 = arith.constant dense<0.000000e+00> : vector<8x256xf32>
    %137 = tpu.matmul %136, %26, %cst_51 {dimension_numbers = #tpu.dot_dimension_numbers<[1], [0], [0], [1], [0, 0, 1, 1], [], []>} : vector<8x64xbf16>, vector<64x256xbf16>, vector<8x256xf32> -> vector<8x256xf32>
    %138 = arith.addf %135, %137 : vector<8x256xf32>
    %139 = vector.extract_strided_slice %138 {offsets = [0, 0], sizes = [8, 192], strides = [1, 1]} : vector<8x256xf32> to vector<8x192xf32>
    %140 = arith.negf %139 : vector<8x192xf32>
    %141 = math.exp %140 : vector<8x192xf32>
    %cst_52 = arith.constant 1.000000e+00 : f32
    %142 = vector.broadcast %cst_52 : f32 to vector<8x192xf32>
    %143 = arith.addf %142, %141 : vector<8x192xf32>
    %144 = arith.divf %142, %143 : vector<8x192xf32>
    %145 = vector.extract_strided_slice %138 {offsets = [0, 192], sizes = [8, 64], strides = [1, 1]} : vector<8x256xf32> to vector<8x64xf32>
    %146 = math.tanh %145 : vector<8x64xf32>
    %147 = vector.extract_strided_slice %144 {offsets = [0, 0], sizes = [8, 64], strides = [1, 1]} : vector<8x192xf32> to vector<8x64xf32>
    %148 = vector.extract_strided_slice %144 {offsets = [0, 64], sizes = [8, 64], strides = [1, 1]} : vector<8x192xf32> to vector<8x64xf32>
    %149 = vector.extract_strided_slice %144 {offsets = [0, 128], sizes = [8, 64], strides = [1, 1]} : vector<8x192xf32> to vector<8x64xf32>
    %150 = arith.mulf %148, %126 : vector<8x64xf32>
    %151 = arith.mulf %147, %146 : vector<8x64xf32>
    %152 = arith.addf %150, %151 : vector<8x64xf32>
    %153 = math.tanh %152 : vector<8x64xf32>
    %154 = arith.mulf %149, %153 : vector<8x64xf32>
    %155 = vector.extract_strided_slice %154 {offsets = [0, 0], sizes = [8, 32], strides = [1, 1]} : vector<8x64xf32> to vector<8x32xf32>
    %c32_53 = arith.constant 32 : index
    %c0_54 = arith.constant 0 : index
    %156 = vector.load %arg14[%c32_53, %c0_54] : memref<64x32xf32, #tpu.memory_space<vmem>>, vector<8x32xf32>
    tpu.vector_store %arg14[%c32_53, %c0_54], %155 {strides = array<i32>} : memref<64x32xf32, #tpu.memory_space<vmem>>, vector<8x32xf32>,
    %157 = vector.extract_strided_slice %154 {offsets = [0, 32], sizes = [8, 32], strides = [1, 1]} : vector<8x64xf32> to vector<8x32xf32>
    %c24_55 = arith.constant 24 : index
    %c0_56 = arith.constant 0 : index
    %158 = vector.load %arg15[%c24_55, %c0_56] : memref<64x32xf32, #tpu.memory_space<vmem>>, vector<8x32xf32>
    tpu.vector_store %arg15[%c24_55, %c0_56], %157 {strides = array<i32>} : memref<64x32xf32, #tpu.memory_space<vmem>>, vector<8x32xf32>,
    %c40_57 = arith.constant 40 : index
    %c0_58 = arith.constant 0 : index
    %159 = vector.load %arg13[%c40_57, %c0_58] : memref<64x256xf32, #tpu.memory_space<vmem>>, vector<8x256xf32>
    %c16_59 = arith.constant 16 : index
    %c0_60 = arith.constant 0 : index
    %160 = vector.load %arg13[%c16_59, %c0_60] : memref<64x256xf32, #tpu.memory_space<vmem>>, vector<8x256xf32>
    %161 = arith.select %25, %159, %160 : vector<8x256xi1>, vector<8x256xf32>
    %162 = arith.truncf %154 : vector<8x64xf32> to vector<8x64xbf16>
    %cst_61 = arith.constant dense<0.000000e+00> : vector<8x256xf32>
    %163 = tpu.matmul %162, %26, %cst_61 {dimension_numbers = #tpu.dot_dimension_numbers<[1], [0], [0], [1], [0, 0, 1, 1], [], []>} : vector<8x64xbf16>, vector<64x256xbf16>, vector<8x256xf32> -> vector<8x256xf32>
    %164 = arith.addf %161, %163 : vector<8x256xf32>
    %165 = vector.extract_strided_slice %164 {offsets = [0, 0], sizes = [8, 192], strides = [1, 1]} : vector<8x256xf32> to vector<8x192xf32>
    %166 = arith.negf %165 : vector<8x192xf32>
    %167 = math.exp %166 : vector<8x192xf32>
    %cst_62 = arith.constant 1.000000e+00 : f32
    %168 = vector.broadcast %cst_62 : f32 to vector<8x192xf32>
    %169 = arith.addf %168, %167 : vector<8x192xf32>
    %170 = arith.divf %168, %169 : vector<8x192xf32>
    %171 = vector.extract_strided_slice %164 {offsets = [0, 192], sizes = [8, 64], strides = [1, 1]} : vector<8x256xf32> to vector<8x64xf32>
    %172 = math.tanh %171 : vector<8x64xf32>
    %173 = vector.extract_strided_slice %170 {offsets = [0, 0], sizes = [8, 64], strides = [1, 1]} : vector<8x192xf32> to vector<8x64xf32>
    %174 = vector.extract_strided_slice %170 {offsets = [0, 64], sizes = [8, 64], strides = [1, 1]} : vector<8x192xf32> to vector<8x64xf32>
    %175 = vector.extract_strided_slice %170 {offsets = [0, 128], sizes = [8, 64], strides = [1, 1]} : vector<8x192xf32> to vector<8x64xf32>
    %176 = arith.mulf %174, %152 : vector<8x64xf32>
    %177 = arith.mulf %173, %172 : vector<8x64xf32>
    %178 = arith.addf %176, %177 : vector<8x64xf32>
    %179 = math.tanh %178 : vector<8x64xf32>
    %180 = arith.mulf %175, %179 : vector<8x64xf32>
    %181 = vector.extract_strided_slice %180 {offsets = [0, 0], sizes = [8, 32], strides = [1, 1]} : vector<8x64xf32> to vector<8x32xf32>
    %c40_63 = arith.constant 40 : index
    %c0_64 = arith.constant 0 : index
    %182 = vector.load %arg14[%c40_63, %c0_64] : memref<64x32xf32, #tpu.memory_space<vmem>>, vector<8x32xf32>
    tpu.vector_store %arg14[%c40_63, %c0_64], %181 {strides = array<i32>} : memref<64x32xf32, #tpu.memory_space<vmem>>, vector<8x32xf32>,
    %183 = vector.extract_strided_slice %180 {offsets = [0, 32], sizes = [8, 32], strides = [1, 1]} : vector<8x64xf32> to vector<8x32xf32>
    %c16_65 = arith.constant 16 : index
    %c0_66 = arith.constant 0 : index
    %184 = vector.load %arg15[%c16_65, %c0_66] : memref<64x32xf32, #tpu.memory_space<vmem>>, vector<8x32xf32>
    tpu.vector_store %arg15[%c16_65, %c0_66], %183 {strides = array<i32>} : memref<64x32xf32, #tpu.memory_space<vmem>>, vector<8x32xf32>,
    %c48_67 = arith.constant 48 : index
    %c0_68 = arith.constant 0 : index
    %185 = vector.load %arg13[%c48_67, %c0_68] : memref<64x256xf32, #tpu.memory_space<vmem>>, vector<8x256xf32>
    %c8_69 = arith.constant 8 : index
    %c0_70 = arith.constant 0 : index
    %186 = vector.load %arg13[%c8_69, %c0_70] : memref<64x256xf32, #tpu.memory_space<vmem>>, vector<8x256xf32>
    %187 = arith.select %25, %185, %186 : vector<8x256xi1>, vector<8x256xf32>
    %188 = arith.truncf %180 : vector<8x64xf32> to vector<8x64xbf16>
    %cst_71 = arith.constant dense<0.000000e+00> : vector<8x256xf32>
    %189 = tpu.matmul %188, %26, %cst_71 {dimension_numbers = #tpu.dot_dimension_numbers<[1], [0], [0], [1], [0, 0, 1, 1], [], []>} : vector<8x64xbf16>, vector<64x256xbf16>, vector<8x256xf32> -> vector<8x256xf32>
    %190 = arith.addf %187, %189 : vector<8x256xf32>
    %191 = vector.extract_strided_slice %190 {offsets = [0, 0], sizes = [8, 192], strides = [1, 1]} : vector<8x256xf32> to vector<8x192xf32>
    %192 = arith.negf %191 : vector<8x192xf32>
    %193 = math.exp %192 : vector<8x192xf32>
    %cst_72 = arith.constant 1.000000e+00 : f32
    %194 = vector.broadcast %cst_72 : f32 to vector<8x192xf32>
    %195 = arith.addf %194, %193 : vector<8x192xf32>
    %196 = arith.divf %194, %195 : vector<8x192xf32>
    %197 = vector.extract_strided_slice %190 {offsets = [0, 192], sizes = [8, 64], strides = [1, 1]} : vector<8x256xf32> to vector<8x64xf32>
    %198 = math.tanh %197 : vector<8x64xf32>
    %199 = vector.extract_strided_slice %196 {offsets = [0, 0], sizes = [8, 64], strides = [1, 1]} : vector<8x192xf32> to vector<8x64xf32>
    %200 = vector.extract_strided_slice %196 {offsets = [0, 64], sizes = [8, 64], strides = [1, 1]} : vector<8x192xf32> to vector<8x64xf32>
    %201 = vector.extract_strided_slice %196 {offsets = [0, 128], sizes = [8, 64], strides = [1, 1]} : vector<8x192xf32> to vector<8x64xf32>
    %202 = arith.mulf %200, %178 : vector<8x64xf32>
    %203 = arith.mulf %199, %198 : vector<8x64xf32>
    %204 = arith.addf %202, %203 : vector<8x64xf32>
    %205 = math.tanh %204 : vector<8x64xf32>
    %206 = arith.mulf %201, %205 : vector<8x64xf32>
    %207 = vector.extract_strided_slice %206 {offsets = [0, 0], sizes = [8, 32], strides = [1, 1]} : vector<8x64xf32> to vector<8x32xf32>
    %c48_73 = arith.constant 48 : index
    %c0_74 = arith.constant 0 : index
    %208 = vector.load %arg14[%c48_73, %c0_74] : memref<64x32xf32, #tpu.memory_space<vmem>>, vector<8x32xf32>
    tpu.vector_store %arg14[%c48_73, %c0_74], %207 {strides = array<i32>} : memref<64x32xf32, #tpu.memory_space<vmem>>, vector<8x32xf32>,
    %209 = vector.extract_strided_slice %206 {offsets = [0, 32], sizes = [8, 32], strides = [1, 1]} : vector<8x64xf32> to vector<8x32xf32>
    %c8_75 = arith.constant 8 : index
    %c0_76 = arith.constant 0 : index
    %210 = vector.load %arg15[%c8_75, %c0_76] : memref<64x32xf32, #tpu.memory_space<vmem>>, vector<8x32xf32>
    tpu.vector_store %arg15[%c8_75, %c0_76], %209 {strides = array<i32>} : memref<64x32xf32, #tpu.memory_space<vmem>>, vector<8x32xf32>,
    %c56_77 = arith.constant 56 : index
    %c0_78 = arith.constant 0 : index
    %211 = vector.load %arg13[%c56_77, %c0_78] : memref<64x256xf32, #tpu.memory_space<vmem>>, vector<8x256xf32>
    %c0_79 = arith.constant 0 : index
    %c0_80 = arith.constant 0 : index
    %212 = vector.load %arg13[%c0_79, %c0_80] : memref<64x256xf32, #tpu.memory_space<vmem>>, vector<8x256xf32>
    %213 = arith.select %25, %211, %212 : vector<8x256xi1>, vector<8x256xf32>
    %214 = arith.truncf %206 : vector<8x64xf32> to vector<8x64xbf16>
    %cst_81 = arith.constant dense<0.000000e+00> : vector<8x256xf32>
    %215 = tpu.matmul %214, %26, %cst_81 {dimension_numbers = #tpu.dot_dimension_numbers<[1], [0], [0], [1], [0, 0, 1, 1], [], []>} : vector<8x64xbf16>, vector<64x256xbf16>, vector<8x256xf32> -> vector<8x256xf32>
    %216 = arith.addf %213, %215 : vector<8x256xf32>
    %217 = vector.extract_strided_slice %216 {offsets = [0, 0], sizes = [8, 192], strides = [1, 1]} : vector<8x256xf32> to vector<8x192xf32>
    %218 = arith.negf %217 : vector<8x192xf32>
    %219 = math.exp %218 : vector<8x192xf32>
    %cst_82 = arith.constant 1.000000e+00 : f32
    %220 = vector.broadcast %cst_82 : f32 to vector<8x192xf32>
    %221 = arith.addf %220, %219 : vector<8x192xf32>
    %222 = arith.divf %220, %221 : vector<8x192xf32>
    %223 = vector.extract_strided_slice %216 {offsets = [0, 192], sizes = [8, 64], strides = [1, 1]} : vector<8x256xf32> to vector<8x64xf32>
    %224 = math.tanh %223 : vector<8x64xf32>
    %225 = vector.extract_strided_slice %222 {offsets = [0, 0], sizes = [8, 64], strides = [1, 1]} : vector<8x192xf32> to vector<8x64xf32>
    %226 = vector.extract_strided_slice %222 {offsets = [0, 64], sizes = [8, 64], strides = [1, 1]} : vector<8x192xf32> to vector<8x64xf32>
    %227 = vector.extract_strided_slice %222 {offsets = [0, 128], sizes = [8, 64], strides = [1, 1]} : vector<8x192xf32> to vector<8x64xf32>
    %228 = arith.mulf %226, %204 : vector<8x64xf32>
    %229 = arith.mulf %225, %224 : vector<8x64xf32>
    %230 = arith.addf %228, %229 : vector<8x64xf32>
    %231 = math.tanh %230 : vector<8x64xf32>
    %232 = arith.mulf %227, %231 : vector<8x64xf32>
    %233 = vector.extract_strided_slice %232 {offsets = [0, 0], sizes = [8, 32], strides = [1, 1]} : vector<8x64xf32> to vector<8x32xf32>
    %c56_83 = arith.constant 56 : index
    %c0_84 = arith.constant 0 : index
    %234 = vector.load %arg14[%c56_83, %c0_84] : memref<64x32xf32, #tpu.memory_space<vmem>>, vector<8x32xf32>
    tpu.vector_store %arg14[%c56_83, %c0_84], %233 {strides = array<i32>} : memref<64x32xf32, #tpu.memory_space<vmem>>, vector<8x32xf32>,
    %235 = vector.extract_strided_slice %232 {offsets = [0, 32], sizes = [8, 32], strides = [1, 1]} : vector<8x64xf32> to vector<8x32xf32>
    %c0_85 = arith.constant 0 : index
    %c0_86 = arith.constant 0 : index
    %236 = vector.load %arg15[%c0_85, %c0_86] : memref<64x32xf32, #tpu.memory_space<vmem>>, vector<8x32xf32>
    tpu.vector_store %arg15[%c0_85, %c0_86], %235 {strides = array<i32>} : memref<64x32xf32, #tpu.memory_space<vmem>>, vector<8x32xf32>,
    %c0_87 = arith.constant 0 : index
    %c0_88 = arith.constant 0 : index
    %237 = vector.load %arg14[%c0_87, %c0_88] : memref<64x32xf32, #tpu.memory_space<vmem>>, vector<64x32xf32>
    %c0_89 = arith.constant 0 : index
    %c0_90 = arith.constant 0 : index
    %238 = vector.load %arg15[%c0_89, %c0_90] : memref<64x32xf32, #tpu.memory_space<vmem>>, vector<64x32xf32>
    %239 = arith.truncf %237 : vector<64x32xf32> to vector<64x32xbf16>
    %c0_91 = arith.constant 0 : index
    %c0_92 = arith.constant 0 : index
    %240 = vector.load %arg4[%c0_91, %c0_92] : memref<32x32xbf16, #tpu.memory_space<vmem>>, vector<32x32xbf16>
    %cst_93 = arith.constant dense<0.000000e+00> : vector<64x32xf32>
    %241 = tpu.matmul %239, %240, %cst_93 {dimension_numbers = #tpu.dot_dimension_numbers<[1], [0], [0], [1], [0, 0, 1, 1], [], []>} : vector<64x32xbf16>, vector<32x32xbf16>, vector<64x32xf32> -> vector<64x32xf32>
    %242 = arith.truncf %238 : vector<64x32xf32> to vector<64x32xbf16>
    %c0_94 = arith.constant 0 : index
    %c0_95 = arith.constant 0 : index
    %243 = vector.load %arg5[%c0_94, %c0_95] : memref<32x32xbf16, #tpu.memory_space<vmem>>, vector<32x32xbf16>
    %cst_96 = arith.constant dense<0.000000e+00> : vector<64x32xf32>
    %244 = tpu.matmul %242, %243, %cst_96 {dimension_numbers = #tpu.dot_dimension_numbers<[1], [0], [0], [1], [0, 0, 1, 1], [], []>} : vector<64x32xbf16>, vector<32x32xbf16>, vector<64x32xf32> -> vector<64x32xf32>
    %245 = arith.addf %241, %244 : vector<64x32xf32>
    %c0_97 = arith.constant 0 : index
    %c0_98 = arith.constant 0 : index
    %246 = vector.load %arg6[%c0_97, %c0_98] : memref<1x32xf32, #tpu.memory_space<vmem>>, vector<1x32xf32>
    %247 = vector.broadcast %246 : vector<1x32xf32> to vector<64x32xf32>
    %248 = arith.addf %245, %247 : vector<64x32xf32>
    %249 = math.tanh %248 : vector<64x32xf32>
    %c0_99 = arith.constant 0 : index
    %c0_100 = arith.constant 0 : index
    %250 = vector.load %arg7[%c0_99, %c0_100] : memref<1x32xf32, #tpu.memory_space<vmem>>, vector<1x32xf32>
    %251 = vector.broadcast %250 : vector<1x32xf32> to vector<64x32xf32>
    %252 = arith.mulf %249, %251 : vector<64x32xf32>
    %cst_101 = arith.constant dense<0.000000e+00> : vector<64xf32>
    %253 = vector.multi_reduction <add>, %252, %cst_101 [1] : vector<64x32xf32> to vector<64xf32>
    %254 = vector.shape_cast %253 : vector<64xf32> to vector<64x1xf32>
    %c0_102 = arith.constant 0 : index
    %c0_103 = arith.constant 0 : index
    %255 = vector.load %arg8[%c0_102, %c0_103] : memref<1x1xf32, #tpu.memory_space<vmem>>, vector<1x1xf32>
    %256 = vector.broadcast %255 : vector<1x1xf32> to vector<64x1xf32>
    %257 = arith.addf %254, %256 : vector<64x1xf32>
    %258 = vector.extract_strided_slice %257 {offsets = [0, 0], sizes = [8, 1], strides = [1, 1]} : vector<64x1xf32> to vector<8x1xf32>
    %259 = vector.extract_strided_slice %257 {offsets = [8, 0], sizes = [8, 1], strides = [1, 1]} : vector<64x1xf32> to vector<8x1xf32>
    %260 = arith.maximumf %258, %259 : vector<8x1xf32>
    %261 = vector.extract_strided_slice %257 {offsets = [16, 0], sizes = [8, 1], strides = [1, 1]} : vector<64x1xf32> to vector<8x1xf32>
    %262 = arith.maximumf %260, %261 : vector<8x1xf32>
    %263 = vector.extract_strided_slice %257 {offsets = [24, 0], sizes = [8, 1], strides = [1, 1]} : vector<64x1xf32> to vector<8x1xf32>
    %264 = arith.maximumf %262, %263 : vector<8x1xf32>
    %265 = vector.extract_strided_slice %257 {offsets = [32, 0], sizes = [8, 1], strides = [1, 1]} : vector<64x1xf32> to vector<8x1xf32>
    %266 = arith.maximumf %264, %265 : vector<8x1xf32>
    %267 = vector.extract_strided_slice %257 {offsets = [40, 0], sizes = [8, 1], strides = [1, 1]} : vector<64x1xf32> to vector<8x1xf32>
    %268 = arith.maximumf %266, %267 : vector<8x1xf32>
    %269 = vector.extract_strided_slice %257 {offsets = [48, 0], sizes = [8, 1], strides = [1, 1]} : vector<64x1xf32> to vector<8x1xf32>
    %270 = arith.maximumf %268, %269 : vector<8x1xf32>
    %271 = vector.extract_strided_slice %257 {offsets = [56, 0], sizes = [8, 1], strides = [1, 1]} : vector<64x1xf32> to vector<8x1xf32>
    %272 = arith.maximumf %270, %271 : vector<8x1xf32>
    %cst_104 = arith.constant 0.000000e+00 : f32
    %273 = vector.broadcast %cst_104 : f32 to vector<8x1xf32>
    %cst_105 = arith.constant 0.000000e+00 : f32
    %274 = vector.broadcast %cst_105 : f32 to vector<8x32xf32>
    %cst_106 = arith.constant 0.000000e+00 : f32
    %275 = vector.broadcast %cst_106 : f32 to vector<8x32xf32>
    %276 = vector.extract_strided_slice %257 {offsets = [0, 0], sizes = [8, 1], strides = [1, 1]} : vector<64x1xf32> to vector<8x1xf32>
    %277 = arith.subf %276, %272 : vector<8x1xf32>
    %278 = math.exp %277 : vector<8x1xf32>
    %279 = arith.addf %273, %278 : vector<8x1xf32>
    %280 = vector.extract_strided_slice %237 {offsets = [0, 0], sizes = [8, 32], strides = [1, 1]} : vector<64x32xf32> to vector<8x32xf32>
    %281 = vector.broadcast %278 : vector<8x1xf32> to vector<8x32xf32>
    %282 = arith.mulf %281, %280 : vector<8x32xf32>
    %283 = arith.addf %274, %282 : vector<8x32xf32>
    %284 = vector.extract_strided_slice %238 {offsets = [0, 0], sizes = [8, 32], strides = [1, 1]} : vector<64x32xf32> to vector<8x32xf32>
    %285 = vector.broadcast %278 : vector<8x1xf32> to vector<8x32xf32>
    %286 = arith.mulf %285, %284 : vector<8x32xf32>
    %287 = arith.addf %275, %286 : vector<8x32xf32>
    %288 = vector.extract_strided_slice %257 {offsets = [8, 0], sizes = [8, 1], strides = [1, 1]} : vector<64x1xf32> to vector<8x1xf32>
    %289 = arith.subf %288, %272 : vector<8x1xf32>
    %290 = math.exp %289 : vector<8x1xf32>
    %291 = arith.addf %279, %290 : vector<8x1xf32>
    %292 = vector.extract_strided_slice %237 {offsets = [8, 0], sizes = [8, 32], strides = [1, 1]} : vector<64x32xf32> to vector<8x32xf32>
    %293 = vector.broadcast %290 : vector<8x1xf32> to vector<8x32xf32>
    %294 = arith.mulf %293, %292 : vector<8x32xf32>
    %295 = arith.addf %283, %294 : vector<8x32xf32>
    %296 = vector.extract_strided_slice %238 {offsets = [8, 0], sizes = [8, 32], strides = [1, 1]} : vector<64x32xf32> to vector<8x32xf32>
    %297 = vector.broadcast %290 : vector<8x1xf32> to vector<8x32xf32>
    %298 = arith.mulf %297, %296 : vector<8x32xf32>
    %299 = arith.addf %287, %298 : vector<8x32xf32>
    %300 = vector.extract_strided_slice %257 {offsets = [16, 0], sizes = [8, 1], strides = [1, 1]} : vector<64x1xf32> to vector<8x1xf32>
    %301 = arith.subf %300, %272 : vector<8x1xf32>
    %302 = math.exp %301 : vector<8x1xf32>
    %303 = arith.addf %291, %302 : vector<8x1xf32>
    %304 = vector.extract_strided_slice %237 {offsets = [16, 0], sizes = [8, 32], strides = [1, 1]} : vector<64x32xf32> to vector<8x32xf32>
    %305 = vector.broadcast %302 : vector<8x1xf32> to vector<8x32xf32>
    %306 = arith.mulf %305, %304 : vector<8x32xf32>
    %307 = arith.addf %295, %306 : vector<8x32xf32>
    %308 = vector.extract_strided_slice %238 {offsets = [16, 0], sizes = [8, 32], strides = [1, 1]} : vector<64x32xf32> to vector<8x32xf32>
    %309 = vector.broadcast %302 : vector<8x1xf32> to vector<8x32xf32>
    %310 = arith.mulf %309, %308 : vector<8x32xf32>
    %311 = arith.addf %299, %310 : vector<8x32xf32>
    %312 = vector.extract_strided_slice %257 {offsets = [24, 0], sizes = [8, 1], strides = [1, 1]} : vector<64x1xf32> to vector<8x1xf32>
    %313 = arith.subf %312, %272 : vector<8x1xf32>
    %314 = math.exp %313 : vector<8x1xf32>
    %315 = arith.addf %303, %314 : vector<8x1xf32>
    %316 = vector.extract_strided_slice %237 {offsets = [24, 0], sizes = [8, 32], strides = [1, 1]} : vector<64x32xf32> to vector<8x32xf32>
    %317 = vector.broadcast %314 : vector<8x1xf32> to vector<8x32xf32>
    %318 = arith.mulf %317, %316 : vector<8x32xf32>
    %319 = arith.addf %307, %318 : vector<8x32xf32>
    %320 = vector.extract_strided_slice %238 {offsets = [24, 0], sizes = [8, 32], strides = [1, 1]} : vector<64x32xf32> to vector<8x32xf32>
    %321 = vector.broadcast %314 : vector<8x1xf32> to vector<8x32xf32>
    %322 = arith.mulf %321, %320 : vector<8x32xf32>
    %323 = arith.addf %311, %322 : vector<8x32xf32>
    %324 = vector.extract_strided_slice %257 {offsets = [32, 0], sizes = [8, 1], strides = [1, 1]} : vector<64x1xf32> to vector<8x1xf32>
    %325 = arith.subf %324, %272 : vector<8x1xf32>
    %326 = math.exp %325 : vector<8x1xf32>
    %327 = arith.addf %315, %326 : vector<8x1xf32>
    %328 = vector.extract_strided_slice %237 {offsets = [32, 0], sizes = [8, 32], strides = [1, 1]} : vector<64x32xf32> to vector<8x32xf32>
    %329 = vector.broadcast %326 : vector<8x1xf32> to vector<8x32xf32>
    %330 = arith.mulf %329, %328 : vector<8x32xf32>
    %331 = arith.addf %319, %330 : vector<8x32xf32>
    %332 = vector.extract_strided_slice %238 {offsets = [32, 0], sizes = [8, 32], strides = [1, 1]} : vector<64x32xf32> to vector<8x32xf32>
    %333 = vector.broadcast %326 : vector<8x1xf32> to vector<8x32xf32>
    %334 = arith.mulf %333, %332 : vector<8x32xf32>
    %335 = arith.addf %323, %334 : vector<8x32xf32>
    %336 = vector.extract_strided_slice %257 {offsets = [40, 0], sizes = [8, 1], strides = [1, 1]} : vector<64x1xf32> to vector<8x1xf32>
    %337 = arith.subf %336, %272 : vector<8x1xf32>
    %338 = math.exp %337 : vector<8x1xf32>
    %339 = arith.addf %327, %338 : vector<8x1xf32>
    %340 = vector.extract_strided_slice %237 {offsets = [40, 0], sizes = [8, 32], strides = [1, 1]} : vector<64x32xf32> to vector<8x32xf32>
    %341 = vector.broadcast %338 : vector<8x1xf32> to vector<8x32xf32>
    %342 = arith.mulf %341, %340 : vector<8x32xf32>
    %343 = arith.addf %331, %342 : vector<8x32xf32>
    %344 = vector.extract_strided_slice %238 {offsets = [40, 0], sizes = [8, 32], strides = [1, 1]} : vector<64x32xf32> to vector<8x32xf32>
    %345 = vector.broadcast %338 : vector<8x1xf32> to vector<8x32xf32>
    %346 = arith.mulf %345, %344 : vector<8x32xf32>
    %347 = arith.addf %335, %346 : vector<8x32xf32>
    %348 = vector.extract_strided_slice %257 {offsets = [48, 0], sizes = [8, 1], strides = [1, 1]} : vector<64x1xf32> to vector<8x1xf32>
    %349 = arith.subf %348, %272 : vector<8x1xf32>
    %350 = math.exp %349 : vector<8x1xf32>
    %351 = arith.addf %339, %350 : vector<8x1xf32>
    %352 = vector.extract_strided_slice %237 {offsets = [48, 0], sizes = [8, 32], strides = [1, 1]} : vector<64x32xf32> to vector<8x32xf32>
    %353 = vector.broadcast %350 : vector<8x1xf32> to vector<8x32xf32>
    %354 = arith.mulf %353, %352 : vector<8x32xf32>
    %355 = arith.addf %343, %354 : vector<8x32xf32>
    %356 = vector.extract_strided_slice %238 {offsets = [48, 0], sizes = [8, 32], strides = [1, 1]} : vector<64x32xf32> to vector<8x32xf32>
    %357 = vector.broadcast %350 : vector<8x1xf32> to vector<8x32xf32>
    %358 = arith.mulf %357, %356 : vector<8x32xf32>
    %359 = arith.addf %347, %358 : vector<8x32xf32>
    %360 = vector.extract_strided_slice %257 {offsets = [56, 0], sizes = [8, 1], strides = [1, 1]} : vector<64x1xf32> to vector<8x1xf32>
    %361 = arith.subf %360, %272 : vector<8x1xf32>
    %362 = math.exp %361 : vector<8x1xf32>
    %363 = arith.addf %351, %362 : vector<8x1xf32>
    %364 = vector.extract_strided_slice %237 {offsets = [56, 0], sizes = [8, 32], strides = [1, 1]} : vector<64x32xf32> to vector<8x32xf32>
    %365 = vector.broadcast %362 : vector<8x1xf32> to vector<8x32xf32>
    %366 = arith.mulf %365, %364 : vector<8x32xf32>
    %367 = arith.addf %355, %366 : vector<8x32xf32>
    %368 = vector.extract_strided_slice %238 {offsets = [56, 0], sizes = [8, 32], strides = [1, 1]} : vector<64x32xf32> to vector<8x32xf32>
    %369 = vector.broadcast %362 : vector<8x1xf32> to vector<8x32xf32>
    %370 = arith.mulf %369, %368 : vector<8x32xf32>
    %371 = arith.addf %359, %370 : vector<8x32xf32>
    %372 = tpu.reciprocal %363 {approx = true} : vector<8x1xf32> -> vector<8x1xf32>
    %373 = vector.broadcast %372 : vector<8x1xf32> to vector<8x32xf32>
    %374 = arith.mulf %367, %373 : vector<8x32xf32>
    %375 = vector.broadcast %372 : vector<8x1xf32> to vector<8x32xf32>
    %376 = arith.mulf %371, %375 : vector<8x32xf32>
    %377 = arith.truncf %374 : vector<8x32xf32> to vector<8x32xbf16>
    %c0_107 = arith.constant 0 : index
    %c0_108 = arith.constant 0 : index
    %378 = vector.load %arg9[%c0_107, %c0_108] : memref<32x4xbf16, #tpu.memory_space<vmem>>, vector<32x4xbf16>
    %cst_109 = arith.constant dense<0.000000e+00> : vector<8x4xf32>
    %379 = tpu.matmul %377, %378, %cst_109 {dimension_numbers = #tpu.dot_dimension_numbers<[1], [0], [0], [1], [0, 0, 1, 1], [], []>} : vector<8x32xbf16>, vector<32x4xbf16>, vector<8x4xf32> -> vector<8x4xf32>
    %380 = arith.truncf %376 : vector<8x32xf32> to vector<8x32xbf16>
    %c0_110 = arith.constant 0 : index
    %c0_111 = arith.constant 0 : index
    %381 = vector.load %arg10[%c0_110, %c0_111] : memref<32x4xbf16, #tpu.memory_space<vmem>>, vector<32x4xbf16>
    %cst_112 = arith.constant dense<0.000000e+00> : vector<8x4xf32>
    %382 = tpu.matmul %380, %381, %cst_112 {dimension_numbers = #tpu.dot_dimension_numbers<[1], [0], [0], [1], [0, 0, 1, 1], [], []>} : vector<8x32xbf16>, vector<32x4xbf16>, vector<8x4xf32> -> vector<8x4xf32>
    %383 = arith.addf %379, %382 : vector<8x4xf32>
    %c0_113 = arith.constant 0 : index
    %c0_114 = arith.constant 0 : index
    %384 = vector.load %arg11[%c0_113, %c0_114] : memref<1x4xf32, #tpu.memory_space<vmem>>, vector<1x4xf32>
    %385 = vector.broadcast %384 : vector<1x4xf32> to vector<8x4xf32>
    %386 = arith.addf %383, %385 : vector<8x4xf32>
    %c0_115 = arith.constant 0 : index
    %c0_116 = arith.constant 0 : index
    %387 = vector.load %arg12[%c0_115, %c0_116] : memref<8x4xf32, #tpu.memory_space<vmem>>, vector<8x4xf32>
    tpu.vector_store %arg12[%c0_115, %c0_116], %386 {strides = array<i32>} : memref<8x4xf32, #tpu.memory_space<vmem>>, vector<8x4xf32>,
    return
  }
}

</mosaic_0001>

<bundles_post_ra>
// kernel: tpu_custom_call.1
= control target key start
LH: loop header
LB: loop body
LE: loop exit
PB: predicated region body
PF: predicated region fallthrough
CT: control target
= control target key end

     0   :  { %s2507_s0 = inlined_call_operand.vmem [shape: bf16[64,32], index: 0, kind: input, shape index: {}]   ;;  %s2508_s1 = inlined_call_operand.hbm [shape: bf16[32,256], index: 1, kind: input, shape index: {}]   ;;  %s2509_s2 = inlined_call_operand.vmem [shape: bf16[64,256], index: 2, kind: input, shape index: {}]   ;;  %s2510_s3 = inlined_call_operand.vmem [shape: f32[1,256], index: 3, kind: input, shape index: {}]   ;;  %s2511_s4 = inlined_call_operand.vmem [shape: bf16[32,32], index: 4, kind: input, shape index: {}]   ;;  %s2512_s5 = inlined_call_operand.hbm [shape: bf16[32,32], index: 5, kind: input, shape index: {}]   ;;  %s2513_s6 = inlined_call_operand.vmem [shape: f32[1,32], index: 6, kind: input, shape index: {}]   ;;  %s2514_s7 = inlined_call_operand.vmem [shape: f32[1,32], index: 7, kind: input, shape index: {}]   ;;  %s2515_s8 = inlined_call_operand.<no memory space> [shape: f32[1,1], index: 8, kind: input, shape index: {}]   ;;  %s2516_s9 = inlined_call_operand.vmem [shape: bf16[32,4], index: 9, kind: input, shape index: {}]   ;;  %s2517_s10 = inlined_call_operand.vmem [shape: bf16[32,4], index: 10, kind: input, shape index: {}]   ;;  %s2518_s11 = inlined_call_operand.vmem [shape: f32[1,4], index: 11, kind: input, shape index: {}]   ;;  %s2519_s12 = inlined_call_operand.vmem [shape: f32[8,4], index: 12, kind: output, shape index: {}]  }
   0x1   :  { %v17_v0 = vstv %s2515_s8 }
   0x2   :  { %18 = vst [vmem:[#allocation5] sm:$0x1] %v17_v0 }
   0x3   :  { %19 = vsyncpa [#allocation7], 0 }
   0x4   :  { %20 = vsyncpa [#allocation9], 0  ;;  %s1908_s23 = smov [#allocation6]  }
   0x5   :  { %s28_s24 = sshll.u32 %s1908_s23, 4  ;;  %s29_s24 = int_to_ptr.vmem [resolvable:$true] %s28_s24 }
   0x6   :  { %s1872_s25 = scalar_lea.vmem %s29_s24, 512  ;;  %p1877_p1 = scmp.lt.s32.totalorder %s29_s24, %s29_s24 }
   0x7   :  { %p1873_p0 = scmp.ne.s32.totalorder %s29_s24, %s1872_s25  ;;  %p1878_p2 = scmp.lt.s32.totalorder %s1872_s25, %s1872_s25 }
   0x9   :  { %p1879_p3 = por %p1878_p2, %p1877_p1 }
   0xb   :  { %p1880_p4 = pnand %p1879_p3, %p1873_p0 }
   0xd   :  { %1883 = shalt.err (!%p1880_p4)
}
   0xe   :  { %s1909_s26 = smov 128   ;;  %s1910_s27 = smov 8  }
   0xf   :  { %34 = dma.hbm_to_vmem [thread:$0]  %s2508_s1, 512, %s29_s24, [#allocation7], %s1909_s26, %s1909_s26, %s1910_s27  }
  0x10   :  { %s1911_s8 = smov [#allocation8]  }
  0x11   :  { %s46_s30 = sshll.u32 %s1911_s8, 4  ;;  %s47_s30 = int_to_ptr.vmem [resolvable:$true] %s46_s30 }
  0x12   :  { %s1892_s13 = scalar_lea.vmem %s47_s30, 256  ;;  %p1897_p6 = scmp.lt.s32.totalorder %s47_s30, %s47_s30 }
  0x13   :  { %p1893_p5 = scmp.ne.s32.totalorder %s47_s30, %s1892_s13  ;;  %p1898_p7 = scmp.lt.s32.totalorder %s1892_s13, %s1892_s13 }
  0x15   :  { %p1899_p8 = por %p1898_p7, %p1897_p6 }
  0x17   :  { %p1900_p9 = pnand %p1899_p8, %p1893_p5 }
  0x19   :  { %1903 = shalt.err (!%p1900_p9)
}
  0x1a   :  { %s1912_s14 = smov 64   ;;  %s1913_s15 = smov 4  }
  0x1b   :  { %52 = dma.hbm_to_vmem [thread:$0]  %s2512_s5, 256, %s47_s30, [#allocation9], %s1912_s14, %s1912_s14, %s1913_s15  }
  0x1c   :  { %1904 = dma.done.wait [#allocation7], 512  }
  0x1d   :  { %1905 = vsyncadd [#allocation7], 4294966784 }
  0x1e   :  { %1906 = dma.done.wait [#allocation9], 256  }
  0x1f   :  { %1907 = vsyncadd [#allocation9], 4294967040  ;;  %v1914_v1 = vmov 0   ;;  %v1704_v2 = vld [vmem:[#allocation6 + $0x14] ss:$8 sps:$4 sm:$0xff]   ;;  %vm136_vm0 = vcmask 261120   ;;  %v86_v18 = vlaneseq }
  0x20   :  { %181 = vmatprep.mubr.bf16.mxu0 %v1914_v1  ;;  %357 = vmatprep.mubr.bf16.mxu1 %v1914_v1  ;;  %v1706_v3 = vld [vmem:[#allocation6 + $0x10] ss:$8 sps:$4 sm:$0xff]   ;;  %v1707_v4 = vld [vmem:[#allocation6 + $0x4] ss:$8 sps:$4 sm:$0xff]   ;;  %v1709_v5 = vld [vmem:[#allocation6] ss:$8 sps:$4 sm:$0xff]  }
  0x21   :  { %1703 = vset.pattern.permute.xlu0 %v1914_v1  ;;  %1702 = vset.pattern.permute.xlu1 %v1914_v1  ;;  %v1710_v6 = vld [vmem:[%s2507_s0] sm:$0xff]   ;;  %v2004_v7 = vld [vmem:[%s2509_s2 + $0x34] ss:$8 sps:$4 sm:$0xff]   ;;  %v2009_v8 = vld [vmem:[%s2509_s2 + $0x30] ss:$8 sps:$4 sm:$0xff]   ;;  %v87_v19 = vshrl.u32 %v86_v18, 7 }
  0x22   :  { %161 = vmatprep.subr.bf16.mxu0 %v1704_v2  ;;  %v2014_v9 = vld [vmem:[%s2509_s2 + $0x24] ss:$8 sps:$4 sm:$0xff]   ;;  %333 = vmatprep.subr.bf16.mxu1 %v2004_v7  ;;  %v2021_v10 = vld [vmem:[%s2509_s2 + $0x20] ss:$8 sps:$4 sm:$0xff]   ;;  %v2028_v11 = vld [vmem:[%s2509_s2 + $0x14] ss:$8 sps:$4 sm:$0xff]  }
  0x23   :  { %162 = vmatpush1.bf16.msra.mxu0 %v1706_v3  ;;  %334 = vmatpush1.bf16.msra.mxu1 %v2009_v8  ;;  %v2035_v12 = vld [vmem:[%s2509_s2 + $0x10] ss:$8 sps:$4 sm:$0xff]   ;;  %v1711_v13 = vld [vmem:[%s2507_s0 + $0x8] sm:$0xff]   ;;  %v88_v20 = vsub.s32 0, %v87_v19  ;;  %v84_v21 = vld [vmem:[%s2510_s3] sm:$0x3] }
  0x24   :  { %163 = vmatprep.subr.bf16.mxu0 %v1707_v4  ;;  %335 = vmatprep.subr.bf16.mxu1 %v2014_v9  ;;  %v2045_v14 = vld [vmem:[%s2509_s2 + $0x4] ss:$8 sps:$4 sm:$0xff]   ;;  %v2052_v15 = vld [vmem:[%s2509_s2] ss:$8 sps:$4 sm:$0xff]   ;;  %v1718_v16 = vld [vmem:[%s2507_s0 + $0x10] sm:$0xff]   ;;  %v92_v25 = vsub.s32 1, %v87_v19 }
  0x25   :  { %v1725_v17 = vld [vmem:[%s2507_s0 + $0x18] sm:$0xff]   ;;  %v89_v22 = vrot.slane %v84_v21, %v88_v20  ;;  %v239_v31 = vand.u32 127, %v86_v18  ;;  %vm321_vm3 = vcmask 523264   ;;  %vm1917_vm4 = vmmov 0  }
  0x26   :  { %v93_v28 = vrot.slane %v84_v21, %v92_v25  ;;  %vm1561_vm5 = vcmask 31744  }
  0x27   :  { %164 = vmatpush1.bf16.msra.mxu0 %v1709_v5  ;;  %336 = vmatpush1.bf16.msra.mxu1 %v2021_v10  ;;  %v240_v36 = vadd.s32 128, %v239_v31  ;;  %v245_v39 = vand.u32 63, %v239_v31 }
  0x28   :  { %511 = vmatprep.subr.bf16.mxu0 %v2004_v7  ;;  %337 = vmatprep.subr.bf16.mxu1 %v2028_v11 }
  0x29   :  { %v252_v43 = vand.u32 63, %v240_v36  ;;  %vm2103_vm1 = vcmp.lt.s32.totalorder %v245_v39, 32 }
  0x2a   :  { %1577 = vmatmul.mubr.msk.bf16.vlgmr.msra.gmra.mxu0 %vm136_vm0, %v1710_v6 }
  0x2b   :  { %191 = vmatprep.mubr.bf16.mxu0 %v1914_v1  ;;  %512 = vmatpush1.bf16.msra.mxu0 %v2009_v8  ;;  %vm2109_vm2 = vcmp.lt.s32.totalorder %v252_v43, 32 }
  0x2c   :  { %513 = vmatprep.subr.bf16.mxu0 %v2014_v9  ;;  %338 = vmatpush1.bf16.msra.mxu1 %v2035_v12 }
  0x2d   :  { %339 = vmatprep.subr.bf16.mxu1 %v2045_v14 }
  0x2f   :  { %514 = vmatpush1.bf16.msra.mxu0 %v2021_v10 }
  0x30   :  { %515 = vmatprep.subr.bf16.mxu0 %v2028_v11  ;;  %340 = vmatpush1.bf16.msra.mxu1 %v2052_v15 }
  0x31   :  { %422 = vmatprep.subr.bf16.mxu1 %v2004_v7 }
  0x32   :  { %1578 = vmatmul.mubr.msk.bf16.gmra.mxu0 %vm136_vm0, %v1711_v13 }
  0x33   :  { %201 = vmatprep.mubr.bf16.mxu0 %v1914_v1  ;;  %516 = vmatpush1.bf16.msra.mxu0 %v2035_v12 }
  0x34   :  { %517 = vmatprep.subr.bf16.mxu0 %v2045_v14  ;;  %358 = vmatmul.mubr.bf16.vlgmr.msra.gmra.mxu1 %v1914_v1 }
  0x35   :  { %423 = vmatpush1.bf16.msra.mxu1 %v2009_v8  ;;  %446 = vmatprep.mubr.bf16.mxu1 %v1914_v1 }
  0x36   :  { %424 = vmatprep.subr.bf16.mxu1 %v2014_v9 }
  0x37   :  { %518 = vmatpush1.bf16.msra.mxu0 %v2052_v15 }
  0x38   :  { %689 = vmatprep.subr.bf16.mxu0 %v2004_v7 }
  0x39   :  { %425 = vmatpush1.bf16.msra.mxu1 %v2021_v10 }
  0x3a   :  { %1579 = vmatmul.mubr.msk.bf16.gmra.mxu0 %vm136_vm0, %v1718_v16  ;;  %426 = vmatprep.subr.bf16.mxu1 %v2028_v11 }
  0x3b   :  { %211 = vmatprep.mubr.bf16.mxu0 %v1914_v1 }
  0x3d   :  { %427 = vmatpush1.bf16.msra.mxu1 %v2035_v12 }
  0x3e   :  { %428 = vmatprep.subr.bf16.mxu1 %v2045_v14 }
  0x41   :  { %429 = vmatpush1.bf16.msra.mxu1 %v2052_v15 }
  0x42   :  { %1580 = vmatmul.mubr.msk.bf16.gmra.mxu0 %vm136_vm0, %v1725_v17  ;;  %600 = vmatprep.subr.bf16.mxu1 %v2004_v7 }
  0x43   :  { %535 = vmatprep.mubr.bf16.mxu0 %v1914_v1 }
  0xea   :  { %v183_v23 = vpop.f32.mrf.mxu0 }
  0xeb   :  { %v2089_v24 = vadd.f32 %v183_v23, %v89_v22 }
  0xec   :  { %v185_v26 = vpop.f32.mrf.mxu0 }
  0xed   :  { %v2173_v23 = vadd.f32 %v185_v26, %v93_v28 }
  0xee   :  { %v187_v27 = vpop.f32.mrf.mxu0 }
  0xef   :  { %v2091_v29 = vadd.f32 %v187_v27, %v89_v22 }
  0xf0   :  { %v189_v30 = vpop.f32.mrf.mxu0 }
  0xf1   :  { %v2093_v32 = vadd.f32 %v189_v30, %v93_v28 }
  0xf2   :  { %v193_v33 = vpop.f32.mrf.mxu0 }
  0xf3   :  { %v2095_v34 = vadd.f32 %v193_v33, %v89_v22 }
  0xf4   :  { %v195_v35 = vpop.f32.mrf.mxu0  ;;  %v359_v41 = vpop.f32.mrf.mxu1 }
  0xf5   :  { %v2097_v37 = vadd.f32 %v195_v35, %v93_v28 }
  0xf6   :  { %v197_v38 = vpop.f32.mrf.mxu0  ;;  %v361_v45 = vpop.f32.mrf.mxu1 }
  0xf7   :  { %v2099_v40 = vadd.f32 %v197_v38, %v89_v22 }
  0xf8   :  { %v199_v42 = vpop.f32.mrf.mxu0  ;;  %v363_v49 = vpop.f32.mrf.mxu1 }
  0xf9   :  { %v2101_v44 = vadd.f32 %v199_v42, %v93_v28 }
  0xfa   :  { %v203_v46 = vpop.f32.mrf.mxu0  ;;  %v364_v53 = vpop.f32.mrf.mxu1 }
  0xfb   :  { %v2107_v48 = vadd.f32 %v203_v46, %v89_v22 }
  0xfc   :  { %v205_v50 = vpop.f32.mrf.mxu0 }
  0xfd   :  { %v2113_v52 = vadd.f32 %v205_v50, %v93_v28  ;;  %v586_v54 = vsel %vm2103_vm1, %v2099_v40, %v2107_v48  ;;  %v675_v55 = vsel %vm2103_vm1, %v2107_v48, %v2099_v40 }
  0xfe   :  { %v207_v56 = vpop.f32.mrf.mxu0 }
  0xff   :  { %v2123_v57 = vadd.f32 %v207_v56, %v89_v22  ;;  %v587_v58 = vsel %vm2109_vm2, %v2101_v44, %v2113_v52  ;;  %v676_v59 = vsel %vm2109_vm2, %v2113_v52, %v2101_v44 }
 0x100   :  { %v209_v60 = vpop.f32.mrf.mxu0 }
 0x101   :  { %v2133_v61 = vadd.f32 %v209_v60, %v93_v28  ;;  %v497_v62 = vsel %vm2103_vm1, %v2095_v34, %v2123_v57  ;;  %v764_v63 = vsel %vm2103_vm1, %v2123_v57, %v2095_v34 }
 0x102   :  { %v213_v0 = vpop.f32.mrf.mxu0 }
 0x103   :  { %v2143_v2 = vadd.f32 %v213_v0, %v89_v22  ;;  %v498_v3 = vsel %vm2109_vm2, %v2097_v37, %v2133_v61  ;;  %v765_v4 = vsel %vm2109_vm2, %v2133_v61, %v2097_v37 }
 0x104   :  { %v215_v5 = vpop.f32.mrf.mxu0 }
 0x105   :  { %v2153_v6 = vadd.f32 %v215_v5, %v93_v28  ;;  %v408_v13 = vsel %vm2103_vm1, %v2091_v29, %v2143_v2  ;;  %v853_v16 = vsel %vm2103_vm1, %v2143_v2, %v2091_v29 }
 0x106   :  { %v217_v17 = vpop.f32.mrf.mxu0 }
 0x107   :  { %v2163_v18 = vadd.f32 %v217_v17, %v89_v22  ;;  %v409_v19 = vsel %vm2109_vm2, %v2093_v32, %v2153_v6  ;;  %v854_v20 = vsel %vm2109_vm2, %v2153_v6, %v2093_v32  ;;  %v1726_v6 = vld [vmem:[%s2511_s4 + $0x8] sm:$0xff]  }
 0x108   :  { %v219_v21 = vpop.f32.mrf.mxu0 }
 0x109   :  { %v279_v25 = vsel %vm2103_vm1, %v2089_v24, %v2163_v18  ;;  %v2179_v22 = vadd.f32 %v219_v21, %v93_v28  ;;  %v942_v27 = vsel %vm2103_vm1, %v2163_v18, %v2089_v24 }
 0x10a   :  { %v366_v30 = vadd.f32 %v359_v41, %v279_v25 }
 0x10b   :  { %v280_v31 = vsel %vm2109_vm2, %v2173_v23, %v2179_v22  ;;  %v943_v26 = vsel %vm2109_vm2, %v2179_v22, %v2173_v23 }
 0x10c   :  { %v367_v33 = vadd.f32 %v361_v45, %v280_v31  ;;  %v1589_v35 = vmul.f32 -1.442695, %v366_v30 }
 0x10e   :  { %1734 = vtanh.f32 %v367_v33  ;;  %v1590_v45 = vmul.f32 -1.442695, %v367_v33 }
 0x10f   :  { %1736 = vpow2.f32 %v1589_v35 }
 0x11b   :  { %v1735_v28 = vpop.eup %1734 }
 0x11c   :  { %383 = vrot.lane.b32.xlu0 %v1735_v28, %s1912_s14  ;;  %v1737_v36 = vpop.eup %1736 }
 0x11d   :  { %v374_v38 = vadd.f32 1.0, %v1737_v36 }
 0x11f   :  { %1738 = vrcp.f32 %v374_v38 }
 0x12c   :  { %v1739_v39 = vpop.eup %1738 }
 0x12d   :  { %v381_v43 = vmul.f32 0.0, %v1739_v39 }
 0x18e   :  { %v384_v41 = vpop.permute.xlu0 %383 }
 0x18f   :  { %v386_v42 = vmul.f32 %v1739_v39, %v384_v41 }
 0x191   :  { %388 = vrot.lane.b32.xlu0 %v386_v42, %s1912_s14 }
 0x203   :  { %v389_v46 = vpop.permute.xlu0 %388 }
 0x204   :  { %v391_v49 = vadd.f32 %v389_v46, %v381_v43 }
 0x206   :  { %1740 = vtanh.f32 %v391_v49 }
 0x207   :  { %1742 = vpow2.f32 %v1590_v45 }
 0x213   :  { %v1741_v50 = vpop.eup %1740 }
 0x214   :  { %394 = vrot.lane.b32.xlu1 %v1741_v50, %s1912_s14  ;;  %v1743_v53 = vpop.eup %1742 }
 0x215   :  { %v375_v56 = vadd.f32 1.0, %v1743_v53 }
 0x217   :  { %1744 = vrcp.f32 %v375_v56 }
 0x224   :  { %v1745_v60 = vpop.eup %1744 }
 0x286   :  { %v395_v0 = vpop.permute.xlu1 %394 }
 0x287   :  { %v2196_v5 = vmul.f32 %v1745_v60, %v395_v0 }
 0x289   :  { %398 = vst.msk [vmem:[#allocation3] sm:$0xff] %vm136_vm0, %v2196_v5  ;;  %v410_v17 = vpack.c.bf16 %v2196_v5, %v2196_v5 }
 0x28b   :  { %1591 = vmatmul.mubr.msk.bf16.vlgmr.msra.gmra.mxu1 %vm321_vm3, %v410_v17 }
 0x28c   :  { %601 = vmatpush1.bf16.msra.mxu1 %v2009_v8  ;;  %624 = vmatprep.mubr.bf16.mxu1 %v1914_v1 }
 0x28d   :  { %602 = vmatprep.subr.bf16.mxu1 %v2014_v9 }
 0x290   :  { %603 = vmatpush1.bf16.msra.mxu1 %v2021_v10 }
 0x291   :  { %604 = vmatprep.subr.bf16.mxu1 %v2028_v11 }
 0x294   :  { %605 = vmatpush1.bf16.msra.mxu1 %v2035_v12 }
 0x295   :  { %606 = vmatprep.subr.bf16.mxu1 %v2045_v14 }
 0x298   :  { %607 = vmatpush1.bf16.msra.mxu1 %v2052_v15 }
 0x299   :  { %778 = vmatprep.subr.bf16.mxu1 %v2004_v7 }
 0x34b   :  { %v448_v21 = vpop.f32.mrf.mxu1 }
 0x34c   :  { %v455_v25 = vadd.f32 %v448_v21, %v408_v13 }
 0x34d   :  { %v450_v30 = vpop.f32.mrf.mxu1 }
 0x34e   :  { %v456_v31 = vadd.f32 %v450_v30, %v409_v19  ;;  %v1592_v36 = vmul.f32 -1.442695, %v455_v25 }
 0x34f   :  { %v452_v33 = vpop.f32.mrf.mxu1 }
 0x350   :  { %1746 = vtanh.f32 %v456_v31  ;;  %v1593_v45 = vmul.f32 -1.442695, %v456_v31 }
 0x351   :  { %v453_v28 = vpop.f32.mrf.mxu1  ;;  %1748 = vpow2.f32 %v1592_v36 }
 0x35d   :  { %v1747_v35 = vpop.eup %1746 }
 0x35e   :  { %472 = vrot.lane.b32.xlu1 %v1747_v35, %s1912_s14  ;;  %v1749_v38 = vpop.eup %1748 }
 0x35f   :  { %v463_v39 = vadd.f32 1.0, %v1749_v38 }
 0x361   :  { %1750 = vrcp.f32 %v463_v39 }
 0x36e   :  { %v1751_v41 = vpop.eup %1750 }
 0x36f   :  { %v470_v46 = vmul.f32 %v1751_v41, %v391_v49 }
 0x3d0   :  { %v473_v42 = vpop.permute.xlu1 %472 }
 0x3d1   :  { %v475_v43 = vmul.f32 %v1751_v41, %v473_v42 }
 0x3d3   :  { %477 = vrot.lane.b32.xlu0 %v475_v43, %s1912_s14 }
 0x445   :  { %v478_v13 = vpop.permute.xlu0 %477 }
 0x446   :  { %v480_v50 = vadd.f32 %v478_v13, %v470_v46 }
 0x448   :  { %1752 = vtanh.f32 %v480_v50 }
 0x449   :  { %1754 = vpow2.f32 %v1593_v45 }
 0x455   :  { %v1753_v19 = vpop.eup %1752 }
 0x456   :  { %483 = vrot.lane.b32.xlu1 %v1753_v19, %s1912_s14  ;;  %v1755_v53 = vpop.eup %1754 }
 0x457   :  { %v464_v56 = vadd.f32 1.0, %v1755_v53 }
 0x459   :  { %1756 = vrcp.f32 %v464_v56 }
 0x466   :  { %v1757_v60 = vpop.eup %1756 }
 0x4c8   :  { %v484_v0 = vpop.permute.xlu1 %483 }
 0x4c9   :  { %v2215_v17 = vmul.f32 %v1757_v60, %v484_v0 }
 0x4cb   :  { %487 = vst.msk [vmem:[#allocation3 + $0x8] sm:$0xff] %vm136_vm0, %v2215_v17  ;;  %v499_v49 = vpack.c.bf16 %v2215_v17, %v2215_v17 }
 0x4cd   :  { %1594 = vmatmul.mubr.msk.bf16.vlgmr.msra.gmra.mxu0 %vm321_vm3, %v499_v49 }
 0x4ce   :  { %690 = vmatpush1.bf16.msra.mxu0 %v2009_v8  ;;  %713 = vmatprep.mubr.bf16.mxu0 %v1914_v1 }
 0x4cf   :  { %691 = vmatprep.subr.bf16.mxu0 %v2014_v9 }
 0x4d2   :  { %692 = vmatpush1.bf16.msra.mxu0 %v2021_v10 }
 0x4d3   :  { %693 = vmatprep.subr.bf16.mxu0 %v2028_v11 }
 0x4d6   :  { %694 = vmatpush1.bf16.msra.mxu0 %v2035_v12 }
 0x4d7   :  { %695 = vmatprep.subr.bf16.mxu0 %v2045_v14 }
 0x4da   :  { %696 = vmatpush1.bf16.msra.mxu0 %v2052_v15 }
 0x4db   :  { %867 = vmatprep.subr.bf16.mxu0 %v2004_v7 }
 0x58d   :  { %v537_v21 = vpop.f32.mrf.mxu0 }
 0x58e   :  { %v544_v25 = vadd.f32 %v537_v21, %v497_v62 }
 0x58f   :  { %v539_v30 = vpop.f32.mrf.mxu0 }
 0x590   :  { %v545_v31 = vadd.f32 %v539_v30, %v498_v3  ;;  %v1595_v36 = vmul.f32 -1.442695, %v544_v25 }
 0x591   :  { %v541_v33 = vpop.f32.mrf.mxu0 }
 0x592   :  { %1758 = vtanh.f32 %v545_v31  ;;  %v1596_v19 = vmul.f32 -1.442695, %v545_v31 }
 0x593   :  { %v542_v28 = vpop.f32.mrf.mxu0  ;;  %1760 = vpow2.f32 %v1595_v36 }
 0x59f   :  { %v1759_v35 = vpop.eup %1758 }
 0x5a0   :  { %561 = vrot.lane.b32.xlu0 %v1759_v35, %s1912_s14  ;;  %v1761_v38 = vpop.eup %1760 }
 0x5a1   :  { %v552_v39 = vadd.f32 1.0, %v1761_v38 }
 0x5a3   :  { %1762 = vrcp.f32 %v552_v39 }
 0x5b0   :  { %v1763_v41 = vpop.eup %1762 }
 0x5b1   :  { %v559_v43 = vmul.f32 %v1763_v41, %v480_v50 }
 0x612   :  { %v562_v62 = vpop.permute.xlu0 %561 }
 0x613   :  { %v564_v42 = vmul.f32 %v1763_v41, %v562_v62 }
 0x615   :  { %566 = vrot.lane.b32.xlu1 %v564_v42, %s1912_s14 }
 0x687   :  { %v567_v46 = vpop.permute.xlu1 %566 }
 0x688   :  { %v569_v13 = vadd.f32 %v567_v46, %v559_v43 }
 0x68a   :  { %1764 = vtanh.f32 %v569_v13 }
 0x68b   :  { %1766 = vpow2.f32 %v1596_v19 }
 0x697   :  { %v1765_v3 = vpop.eup %1764 }
 0x698   :  { %572 = vrot.lane.b32.xlu0 %v1765_v3, %s1912_s14  ;;  %v1767_v45 = vpop.eup %1766 }
 0x699   :  { %v553_v53 = vadd.f32 1.0, %v1767_v45 }
 0x69b   :  { %1768 = vrcp.f32 %v553_v53 }
 0x6a8   :  { %v1769_v56 = vpop.eup %1768 }
 0x70a   :  { %v573_v60 = vpop.permute.xlu0 %572 }
 0x70b   :  { %v2244_v0 = vmul.f32 %v1769_v56, %v573_v60 }
 0x70d   :  { %576 = vst.msk [vmem:[#allocation3 + $0x10] sm:$0xff] %vm136_vm0, %v2244_v0  ;;  %v588_v50 = vpack.c.bf16 %v2244_v0, %v2244_v0 }
 0x70f   :  { %1597 = vmatmul.mubr.msk.bf16.vlgmr.msra.gmra.mxu1 %vm321_vm3, %v588_v50 }
 0x710   :  { %779 = vmatpush1.bf16.msra.mxu1 %v2009_v8  ;;  %802 = vmatprep.mubr.bf16.mxu1 %v1914_v1 }
 0x711   :  { %780 = vmatprep.subr.bf16.mxu1 %v2014_v9 }
 0x714   :  { %781 = vmatpush1.bf16.msra.mxu1 %v2021_v10 }
 0x715   :  { %782 = vmatprep.subr.bf16.mxu1 %v2028_v11 }
 0x718   :  { %783 = vmatpush1.bf16.msra.mxu1 %v2035_v12 }
 0x719   :  { %784 = vmatprep.subr.bf16.mxu1 %v2045_v14 }
 0x71c   :  { %785 = vmatpush1.bf16.msra.mxu1 %v2052_v15 }
 0x71d   :  { %956 = vmatprep.subr.bf16.mxu1 %v2004_v7 }
 0x7cf   :  { %v626_v49 = vpop.f32.mrf.mxu1 }
 0x7d0   :  { %v633_v21 = vadd.f32 %v626_v49, %v586_v54 }
 0x7d1   :  { %v628_v25 = vpop.f32.mrf.mxu1 }
 0x7d2   :  { %v634_v30 = vadd.f32 %v628_v25, %v587_v58  ;;  %v1598_v7 = vmul.f32 -1.442695, %v633_v21 }
 0x7d3   :  { %v630_v31 = vpop.f32.mrf.mxu1 }
 0x7d4   :  { %1770 = vtanh.f32 %v634_v30  ;;  %v1599_v43 = vmul.f32 -1.442695, %v634_v30 }
 0x7d5   :  { %v631_v33 = vpop.f32.mrf.mxu1  ;;  %1772 = vpow2.f32 %v1598_v7 }
 0x7e1   :  { %v1771_v28 = vpop.eup %1770 }
 0x7e2   :  { %650 = vrot.lane.b32.xlu1 %v1771_v28, %s1912_s14  ;;  %v1773_v35 = vpop.eup %1772 }
 0x7e3   :  { %v641_v36 = vadd.f32 1.0, %v1773_v35 }
 0x7e5   :  { %1774 = vrcp.f32 %v641_v36 }
 0x7f2   :  { %v1775_v38 = vpop.eup %1774 }
 0x7f3   :  { %v648_v41 = vmul.f32 %v1775_v38, %v569_v13 }
 0x854   :  { %v651_v54 = vpop.permute.xlu1 %650 }
 0x855   :  { %v653_v39 = vmul.f32 %v1775_v38, %v651_v54 }
 0x857   :  { %655 = vrot.lane.b32.xlu0 %v653_v39, %s1912_s14 }
 0x8c9   :  { %v656_v62 = vpop.permute.xlu0 %655 }
 0x8ca   :  { %v658_v42 = vadd.f32 %v656_v62, %v648_v41 }
 0x8cc   :  { %1776 = vtanh.f32 %v658_v42 }
 0x8cd   :  { %1778 = vpow2.f32 %v1599_v43 }
 0x8d9   :  { %v1777_v58 = vpop.eup %1776 }
 0x8da   :  { %661 = vrot.lane.b32.xlu1 %v1777_v58, %s1912_s14  ;;  %v1779_v46 = vpop.eup %1778 }
 0x8db   :  { %v642_v3 = vadd.f32 1.0, %v1779_v46 }
 0x8dd   :  { %1780 = vrcp.f32 %v642_v3 }
 0x8ea   :  { %v1781_v19 = vpop.eup %1780 }
 0x94c   :  { %v662_v45 = vpop.permute.xlu1 %661 }
 0x94d   :  { %v2273_v53 = vmul.f32 %v1781_v19, %v662_v45 }
 0x94f   :  { %665 = vst.msk [vmem:[#allocation3 + $0x18] sm:$0xff] %vm136_vm0, %v2273_v53  ;;  %v677_v13 = vpack.c.bf16 %v2273_v53, %v2273_v53 }
 0x951   :  { %1600 = vmatmul.mubr.msk.bf16.vlgmr.msra.gmra.mxu0 %vm321_vm3, %v677_v13 }
 0x952   :  { %868 = vmatpush1.bf16.msra.mxu0 %v2009_v8  ;;  %891 = vmatprep.mubr.bf16.mxu0 %v1914_v1 }
 0x953   :  { %869 = vmatprep.subr.bf16.mxu0 %v2014_v9 }
 0x956   :  { %870 = vmatpush1.bf16.msra.mxu0 %v2021_v10 }
 0x957   :  { %871 = vmatprep.subr.bf16.mxu0 %v2028_v11 }
 0x95a   :  { %872 = vmatpush1.bf16.msra.mxu0 %v2035_v12 }
 0x95b   :  { %873 = vmatprep.subr.bf16.mxu0 %v2045_v14 }
 0x95e   :  { %874 = vmatpush1.bf16.msra.mxu0 %v2052_v15 }
 0xa11   :  { %v715_v56 = vpop.f32.mrf.mxu0 }
 0xa12   :  { %v722_v60 = vadd.f32 %v715_v56, %v675_v55 }
 0xa13   :  { %v717_v50 = vpop.f32.mrf.mxu0 }
 0xa14   :  { %v723_v49 = vadd.f32 %v717_v50, %v676_v59  ;;  %v1601_v31 = vmul.f32 -1.442695, %v722_v60 }
 0xa15   :  { %v719_v21 = vpop.f32.mrf.mxu0 }
 0xa16   :  { %1782 = vtanh.f32 %v723_v49  ;;  %v1602_v59 = vmul.f32 -1.442695, %v723_v49 }
 0xa17   :  { %v720_v25 = vpop.f32.mrf.mxu0  ;;  %1784 = vpow2.f32 %v1601_v31 }
 0xa23   :  { %v1783_v30 = vpop.eup %1782 }
 0xa24   :  { %739 = vrot.lane.b32.xlu0 %v1783_v30, %s1912_s14  ;;  %v1785_v33 = vpop.eup %1784 }
 0xa25   :  { %v730_v28 = vadd.f32 1.0, %v1785_v33 }
 0xa27   :  { %1786 = vrcp.f32 %v730_v28 }
 0xa34   :  { %v1787_v40 = vpop.eup %1786 }
 0xa35   :  { %v737_v7 = vmul.f32 %v1787_v40, %v658_v42 }
 0xa96   :  { %v740_v48 = vpop.permute.xlu0 %739 }
 0xa97   :  { %v742_v55 = vmul.f32 %v1787_v40, %v740_v48 }
 0xa99   :  { %744 = vrot.lane.b32.xlu1 %v742_v55, %s1912_s14 }
 0xb0b   :  { %v745_v35 = vpop.permute.xlu1 %744 }
 0xb0c   :  { %v747_v44 = vadd.f32 %v745_v35, %v737_v7 }
 0xb0e   :  { %1788 = vtanh.f32 %v747_v44 }
 0xb0f   :  { %1790 = vpow2.f32 %v1602_v59 }
 0xb1b   :  { %v1789_v52 = vpop.eup %1788 }
 0xb1c   :  { %750 = vrot.lane.b32.xlu0 %v1789_v52, %s1912_s14  ;;  %v1791_v36 = vpop.eup %1790 }
 0xb1d   :  { %v731_v38 = vadd.f32 1.0, %v1791_v36 }
 0xb1f   :  { %1792 = vrcp.f32 %v731_v38 }
 0xb2c   :  { %v1793_v54 = vpop.eup %1792 }
 0xb8e   :  { %v751_v39 = vpop.permute.xlu0 %750 }
 0xb8f   :  { %v2301_v41 = vmul.f32 %v1793_v54, %v751_v39  ;;  %v2352_v54 = vld [vmem:[#allocation3 + $0x8] sm:$0xff] }
 0xb91   :  { %754 = vst.msk [vmem:[#allocation3 + $0x20] sm:$0xff] %vm136_vm0, %v2301_v41  ;;  %v766_v62 = vpack.c.bf16 %v2301_v41, %v2301_v41 }
 0xb93   :  { %1603 = vmatmul.mubr.msk.bf16.vlgmr.msra.gmra.mxu1 %vm321_vm3, %v766_v62  ;;  %v2355_v62 = vld [vmem:[#allocation3] sm:$0xff] }
 0xb94   :  { %957 = vmatpush1.bf16.msra.mxu1 %v2009_v8  ;;  %980 = vmatprep.mubr.bf16.mxu1 %v1914_v1 }
 0xb95   :  { %958 = vmatprep.subr.bf16.mxu1 %v2014_v9 }
 0xb98   :  { %959 = vmatpush1.bf16.msra.mxu1 %v2021_v10 }
 0xb99   :  { %960 = vmatprep.subr.bf16.mxu1 %v2028_v11 }
 0xb9c   :  { %961 = vmatpush1.bf16.msra.mxu1 %v2035_v12 }
 0xb9d   :  { %962 = vmatprep.subr.bf16.mxu1 %v2045_v14 }
 0xba0   :  { %963 = vmatpush1.bf16.msra.mxu1 %v2052_v15 }
 0xba1   :  { %1664 = vmatprep.subr.bf16.mxu1 %v1726_v6 }
 0xc53   :  { %v804_v42 = vpop.f32.mrf.mxu1 }
 0xc54   :  { %v811_v8 = vadd.f32 %v804_v42, %v764_v63  ;;  %v1727_v42 = vld [vmem:[%s2511_s4] sm:$0xff]   ;;  %s1915_s4 = smov 96  }
 0xc55   :  { %v806_v1 = vpop.f32.mrf.mxu1 }
 0xc56   :  { %v812_v9 = vadd.f32 %v806_v1, %v765_v4  ;;  %v1604_v14 = vmul.f32 -1.442695, %v811_v8  ;;  %v1043_v8 = vpack.c.bf16 %v2352_v54, %v2355_v62  ;;  %v2364_v1 = vld [vmem:[#allocation3 + $0x18] sm:$0xff] }
 0xc57   :  { %v808_v10 = vpop.f32.mrf.mxu1 }
 0xc58   :  { %1794 = vtanh.f32 %v812_v9  ;;  %v1605_v4 = vmul.f32 -1.442695, %v812_v9  ;;  %v2368_v10 = vld [vmem:[#allocation3 + $0x10] sm:$0xff] }
 0xc59   :  { %v809_v11 = vpop.f32.mrf.mxu1  ;;  %1796 = vpow2.f32 %v1604_v14 }
 0xc5a   :  { %v1044_v11 = vpack.c.bf16 %v2364_v1, %v2368_v10 }
 0xc65   :  { %v1795_v12 = vpop.eup %1794 }
 0xc66   :  { %828 = vrot.lane.b32.xlu1 %v1795_v12, %s1912_s14  ;;  %v1797_v15 = vpop.eup %1796  ;;  %v2372_v12 = vld [vmem:[#allocation3 + $0x20] sm:$0xff] }
 0xc67   :  { %v819_v58 = vadd.f32 1.0, %v1797_v15 }
 0xc69   :  { %1798 = vrcp.f32 %v819_v58 }
 0xc76   :  { %v1799_v34 = vpop.eup %1798 }
 0xc77   :  { %v826_v43 = vmul.f32 %v1799_v34, %v747_v44 }
 0xcd8   :  { %v829_v57 = vpop.permute.xlu1 %828 }
 0xcd9   :  { %v831_v63 = vmul.f32 %v1799_v34, %v829_v57 }
 0xcdb   :  { %833 = vrot.lane.b32.xlu0 %v831_v63, %s1912_s14 }
 0xd4d   :  { %v834_v46 = vpop.permute.xlu0 %833 }
 0xd4e   :  { %v836_v37 = vadd.f32 %v834_v46, %v826_v43 }
 0xd50   :  { %1800 = vtanh.f32 %v836_v37 }
 0xd51   :  { %1802 = vpow2.f32 %v1605_v4 }
 0xd5d   :  { %v1801_v61 = vpop.eup %1800 }
 0xd5e   :  { %839 = vrot.lane.b32.xlu1 %v1801_v61, %s1912_s14  ;;  %v1803_v3 = vpop.eup %1802 }
 0xd5f   :  { %v820_v19 = vadd.f32 1.0, %v1803_v3 }
 0xd61   :  { %1804 = vrcp.f32 %v820_v19 }
 0xd6e   :  { %v1805_v45 = vpop.eup %1804 }
 0xdd0   :  { %v840_v13 = vpop.permute.xlu1 %839 }
 0xdd1   :  { %v2329_v56 = vmul.f32 %v1805_v45, %v840_v13  ;;  %v1728_v13 = vld [vmem:[#allocation8 + $0x8] sm:$0xff]  }
 0xdd2   :  { %1652 = vmatprep.subr.bf16.mxu0 %v1728_v13 }
 0xdd3   :  { %843 = vst.msk [vmem:[#allocation3 + $0x28] sm:$0xff] %vm136_vm0, %v2329_v56  ;;  %v855_v60 = vpack.c.bf16 %v2329_v56, %v2329_v56 }
 0xdd5   :  { %1606 = vmatmul.mubr.msk.bf16.vlgmr.msra.gmra.mxu0 %vm321_vm3, %v855_v60  ;;  %v1729_v60 = vld [vmem:[#allocation8] sm:$0xff]  }
 0xdd6   :  { %1653 = vmatpush3.bf16.msra.mxu0 %v1728_v13 }
 0xdd7   :  { %1654 = vmatprep.subr.bf16.mxu0 %v1729_v60 }
 0xdda   :  { %v2366_v9 = vld [vmem:[#allocation3 + $0x28] sm:$0xff]  ;;  %1655 = vmatpush3.bf16.msra.mxu0 %v1729_v60  ;;  %v1625_v60 = vld [vmem:[%s2514_s7] ss:$0 sm:$0xff] }
 0xddb   :  { %v1045_v14 = vpack.c.bf16 %v2366_v9, %v2372_v12 }
 0xe95   :  { %v893_v50 = vpop.f32.mrf.mxu0 }
 0xe96   :  { %v900_v49 = vadd.f32 %v893_v50, %v853_v16 }
 0xe97   :  { %v895_v21 = vpop.f32.mrf.mxu0 }
 0xe98   :  { %v901_v25 = vadd.f32 %v895_v21, %v854_v20  ;;  %v1607_v28 = vmul.f32 -1.442695, %v900_v49 }
 0xe99   :  { %v897_v30 = vpop.f32.mrf.mxu0 }
 0xe9a   :  { %1806 = vtanh.f32 %v901_v25  ;;  %v1608_v35 = vmul.f32 -1.442695, %v901_v25 }
 0xe9b   :  { %v898_v31 = vpop.f32.mrf.mxu0  ;;  %1808 = vpow2.f32 %v1607_v28 }
 0xea7   :  { %v1807_v33 = vpop.eup %1806 }
 0xea8   :  { %917 = vrot.lane.b32.xlu0 %v1807_v33, %s1912_s14  ;;  %v1809_v40 = vpop.eup %1808 }
 0xea9   :  { %v908_v48 = vadd.f32 1.0, %v1809_v40 }
 0xeab   :  { %1810 = vrcp.f32 %v908_v48 }
 0xeb8   :  { %v1811_v29 = vpop.eup %1810 }
 0xeb9   :  { %v915_v55 = vmul.f32 %v1811_v29, %v836_v37 }
 0xf1a   :  { %v918_v2 = vpop.permute.xlu0 %917 }
 0xf1b   :  { %v920_v16 = vmul.f32 %v1811_v29, %v918_v2 }
 0xf1d   :  { %922 = vrot.lane.b32.xlu1 %v920_v16, %s1912_s14 }
 0xf8f   :  { %v923_v7 = vpop.permute.xlu1 %922 }
 0xf90   :  { %v925_v32 = vadd.f32 %v923_v7, %v915_v55 }
 0xf92   :  { %1812 = vtanh.f32 %v925_v32 }
 0xf93   :  { %1814 = vpow2.f32 %v1608_v35 }
 0xf9f   :  { %v1813_v20 = vpop.eup %1812 }
 0xfa0   :  { %928 = vrot.lane.b32.xlu0 %v1813_v20, %s1912_s14  ;;  %v1815_v44 = vpop.eup %1814 }
 0xfa1   :  { %v909_v52 = vadd.f32 1.0, %v1815_v44 }
 0xfa3   :  { %1816 = vrcp.f32 %v909_v52 }
 0xfb0   :  { %v1817_v59 = vpop.eup %1816 }
0x1012   :  { %v929_v36 = vpop.permute.xlu0 %928 }
0x1013   :  { %v931_v38 = vmul.f32 %v1817_v59, %v929_v36 }
0x1015   :  { %932 = vst.msk [vmem:[#allocation3 + $0x30] sm:$0xff] %vm136_vm0, %v931_v38  ;;  %v944_v39 = vpack.c.bf16 %v931_v38, %v931_v38 }
0x1017   :  { %1609 = vmatmul.mubr.msk.bf16.vlgmr.msra.gmra.mxu1 %vm321_vm3, %v944_v39  ;;  %v1624_v39 = vld [vmem:[%s2513_s6] ss:$0 sm:$0xff] }
0x1018   :  { %1665 = vmatpush3.bf16.msra.mxu1 %v1726_v6  ;;  %1668 = vmatprep.mubr.msk.bf16.mxu1 %vm136_vm0, %v1043_v8 }
0x1019   :  { %1666 = vmatprep.subr.bf16.mxu1 %v1727_v42 }
0x101c   :  { %1667 = vmatpush3.bf16.msra.mxu1 %v1727_v42  ;;  %v2406_v25 = vld [vmem:[#allocation3 + $0x30] sm:$0xff] }
0x101f   :  { %1669 = vmatmul.mubr.msk.bf16.vlgmr.msra.gmra.mxu1 %vm136_vm0, %v1044_v11 }
0x1020   :  { %1672 = vmatprep.mubr.msk.bf16.mxu1 %vm136_vm0, %v1045_v14 }
0x10d7   :  { %v982_v15 = vpop.f32.mrf.mxu1 }
0x10d8   :  { %v989_v58 = vadd.f32 %v982_v15, %v942_v27 }
0x10d9   :  { %v984_v34 = vpop.f32.mrf.mxu1 }
0x10da   :  { %v990_v57 = vadd.f32 %v984_v34, %v943_v26  ;;  %v1610_v37 = vmul.f32 -1.442695, %v989_v58 }
0x10db   :  { %v986_v63 = vpop.f32.mrf.mxu1 }
0x10dc   :  { %1818 = vtanh.f32 %v990_v57 }
0x10dd   :  { %v987_v43 = vpop.f32.mrf.mxu1  ;;  %1820 = vpow2.f32 %v1610_v37 }
0x10df   :  { %v1670_v44 = vpop.f32.mrf.mxu1 }
0x10e1   :  { %v1206_v52 = vpop.f32.mrf.mxu1 }
0x10e3   :  { %v1671_v59 = vpop.f32.mrf.mxu1 }
0x10e5   :  { %v1209_v36 = vpop.f32.mrf.mxu1 }
0x10e9   :  { %v1819_v46 = vpop.eup %1818 }
0x10ea   :  { %1006 = vrot.lane.b32.xlu1 %v1819_v46, %s1912_s14  ;;  %v1821_v47 = vpop.eup %1820 }
0x10eb   :  { %v997_v61 = vadd.f32 1.0, %v1821_v47 }
0x10ed   :  { %1822 = vrcp.f32 %v997_v61 }
0x10fa   :  { %v1823_v24 = vpop.eup %1822 }
0x10fb   :  { %v1004_v51 = vmul.f32 %v1823_v24, %v925_v32 }
0x115c   :  { %v1007_v18 = vpop.permute.xlu1 %1006 }
0x115d   :  { %v1009_v27 = vmul.f32 %v1823_v24, %v1007_v18 }
0x115f   :  { %1011 = vrot.lane.b32.xlu0 %v1009_v27, %s1912_s14 }
0x1163   :  { %934 = vrot.lane.b32.xlu0 %v931_v38, %s1915_s4 }
0x1167   :  { %756 = vrot.lane.b32.xlu0 %v2301_v41, %s1915_s4 }
0x116b   :  { %578 = vrot.lane.b32.xlu0 %v2244_v0, %s1915_s4 }
0x116f   :  { %400 = vrot.lane.b32.xlu0 %v2196_v5, %s1915_s4  ;;  %v1611_v5 = vmul.f32 -1.442695, %v990_v57 }
0x11d1   :  { %v1012_v23 = vpop.permute.xlu0 %1011 }
0x11d2   :  { %v1014_v22 = vadd.f32 %v1012_v23, %v1004_v51 }
0x11d4   :  { %1824 = vtanh.f32 %v1014_v22 }
0x11d5   :  { %v935_v26 = vpop.permute.xlu0 %934  ;;  %1826 = vpow2.f32 %v1611_v5 }
0x11d6   :  { %937 = vst.msk [vmem:[#allocation4 + $0x8] sm:$0xff] %vm136_vm0, %v935_v26 }
0x11d9   :  { %v757_v4 = vpop.permute.xlu0 %756 }
0x11da   :  { %759 = vst.msk [vmem:[#allocation4 + $0x18] sm:$0xff] %vm136_vm0, %v757_v4 }
0x11dd   :  { %v579_v3 = vpop.permute.xlu0 %578  ;;  %v2421_v48 = vld [vmem:[#allocation4 + $0x8] sm:$0xff] }
0x11de   :  { %581 = vst.msk [vmem:[#allocation4 + $0x28] sm:$0xff] %vm136_vm0, %v579_v3 }
0x11e1   :  { %v1825_v41 = vpop.eup %1824  ;;  %v401_v19 = vpop.permute.xlu0 %400  ;;  %v2429_v2 = vld [vmem:[#allocation4 + $0x18] sm:$0xff] }
0x11e2   :  { %403 = vst.msk [vmem:[#allocation4 + $0x38] sm:$0xff] %vm136_vm0, %v401_v19  ;;  %1017 = vrot.lane.b32.xlu1 %v1825_v41, %s1912_s14  ;;  %v1827_v0 = vpop.eup %1826 }
0x11e3   :  { %v998_v45 = vadd.f32 1.0, %v1827_v0 }
0x11e5   :  { %1828 = vrcp.f32 %v998_v45  ;;  %v2437_v7 = vld [vmem:[#allocation4 + $0x28] sm:$0xff] }
0x11e9   :  { %v2444_v20 = vld [vmem:[#allocation4 + $0x38] sm:$0xff] }
0x11f2   :  { %v1829_v50 = vpop.eup %1828 }
0x1254   :  { %v1018_v49 = vpop.permute.xlu1 %1017 }
0x1255   :  { %v1020_v21 = vmul.f32 %v1829_v50, %v1018_v49 }
0x1257   :  { %1021 = vst.msk [vmem:[#allocation3 + $0x38] sm:$0xff] %vm136_vm0, %v1020_v21  ;;  %1023 = vrot.lane.b32.xlu1 %v1020_v21, %s1915_s4 }
0x125b   :  { %845 = vrot.lane.b32.xlu1 %v2329_v56, %s1915_s4 }
0x125e   :  { %v2408_v30 = vld [vmem:[#allocation3 + $0x38] sm:$0xff] }
0x125f   :  { %667 = vrot.lane.b32.xlu1 %v2273_v53, %s1915_s4  ;;  %v1046_v31 = vpack.c.bf16 %v2408_v30, %v2406_v25 }
0x1261   :  { %1673 = vmatmul.mubr.msk.bf16.gmra.mxu1 %vm136_vm0, %v1046_v31 }
0x1263   :  { %489 = vrot.lane.b32.xlu1 %v2215_v17, %s1915_s4 }
0x12c9   :  { %v1024_v33 = vpop.permute.xlu1 %1023 }
0x12ca   :  { %1026 = vst.msk [vmem:[#allocation4] sm:$0xff] %vm136_vm0, %v1024_v33 }
0x12cd   :  { %v846_v28 = vpop.permute.xlu1 %845 }
0x12ce   :  { %848 = vst.msk [vmem:[#allocation4 + $0x10] sm:$0xff] %vm136_vm0, %v846_v28 }
0x12d1   :  { %v668_v56 = vpop.permute.xlu1 %667  ;;  %v2419_v40 = vld [vmem:[#allocation4] sm:$0xff] }
0x12d2   :  { %670 = vst.msk [vmem:[#allocation4 + $0x20] sm:$0xff] %vm136_vm0, %v668_v56  ;;  %v1051_v53 = vpack.c.bf16 %v2421_v48, %v2419_v40 }
0x12d4   :  { %1656 = vmatprep.mubr.msk.bf16.mxu0 %vm136_vm0, %v1051_v53 }
0x12d5   :  { %v490_v29 = vpop.permute.xlu1 %489  ;;  %v2427_v17 = vld [vmem:[#allocation4 + $0x10] sm:$0xff] }
0x12d6   :  { %492 = vst.msk [vmem:[#allocation4 + $0x30] sm:$0xff] %vm136_vm0, %v490_v29  ;;  %v1052_v16 = vpack.c.bf16 %v2429_v2, %v2427_v17 }
0x12d8   :  { %1657 = vmatmul.mubr.msk.bf16.vlgmr.msra.gmra.mxu0 %vm136_vm0, %v1052_v16 }
0x12d9   :  { %v2435_v55 = vld [vmem:[#allocation4 + $0x20] sm:$0xff] }
0x12da   :  { %v1053_v32 = vpack.c.bf16 %v2437_v7, %v2435_v55 }
0x12dc   :  { %1660 = vmatprep.mubr.msk.bf16.mxu0 %vm136_vm0, %v1053_v32 }
0x12dd   :  { %v2442_v6 = vld [vmem:[#allocation4 + $0x30] sm:$0xff] }
0x12de   :  { %v1054_v35 = vpack.c.bf16 %v2444_v20, %v2442_v6 }
0x12e0   :  { %1661 = vmatmul.mubr.msk.bf16.gmra.mxu0 %vm136_vm0, %v1054_v35 }
0x1321   :  { %v1674_v8 = vpop.f32.mrf.mxu1 }
0x1323   :  { %v1222_v63 = vpop.f32.mrf.mxu1 }
0x1325   :  { %v1675_v18 = vpop.f32.mrf.mxu1 }
0x1327   :  { %v1225_v3 = vpop.f32.mrf.mxu1 }
0x1398   :  { %v1658_v38 = vpop.f32.mrf.mxu0 }
0x1399   :  { %v1215_v42 = vadd.f32 %v1670_v44, %v1658_v38 }
0x139a   :  { %v1117_v11 = vpop.f32.mrf.mxu0 }
0x139b   :  { %v1246_v14 = vadd.f32 %v1624_v39, %v1215_v42  ;;  %v1207_v15 = vadd.f32 %v1206_v52, %v1117_v11 }
0x139c   :  { %v1659_v58 = vpop.f32.mrf.mxu0 }
0x139d   :  { %v1244_v34 = vadd.f32 %v1624_v39, %v1207_v15  ;;  %v1218_v57 = vadd.f32 %v1671_v59, %v1659_v58  ;;  %1830 = vtanh.f32 %v1246_v14  ;;  %v1626_v58 = vld [vmem:[#allocation5] ss:$0 sm:$0xff] }
0x139e   :  { %v1120_v43 = vpop.f32.mrf.mxu0 }
0x139f   :  { %1832 = vtanh.f32 %v1244_v34  ;;  %v1247_v46 = vadd.f32 %v1624_v39, %v1218_v57  ;;  %v1210_v37 = vadd.f32 %v1209_v36, %v1120_v43 }
0x13a0   :  { %v1662_v47 = vpop.f32.mrf.mxu0 }
0x13a1   :  { %v1245_v61 = vadd.f32 %v1624_v39, %v1210_v37  ;;  %v1231_v24 = vadd.f32 %v1674_v8, %v1662_v47  ;;  %1834 = vtanh.f32 %v1247_v46 }
0x13a2   :  { %v1133_v27 = vpop.f32.mrf.mxu0 }
0x13a3   :  { %1836 = vtanh.f32 %v1245_v61  ;;  %v1250_v51 = vadd.f32 %v1624_v39, %v1231_v24  ;;  %v1223_v23 = vadd.f32 %v1222_v63, %v1133_v27 }
0x13a4   :  { %v1663_v22 = vpop.f32.mrf.mxu0 }
0x13a5   :  { %v1248_v26 = vadd.f32 %v1624_v39, %v1223_v23  ;;  %v1234_v4 = vadd.f32 %v1675_v18, %v1663_v22  ;;  %1838 = vtanh.f32 %v1250_v51 }
0x13a6   :  { %v1136_v41 = vpop.f32.mrf.mxu0 }
0x13a7   :  { %1840 = vtanh.f32 %v1248_v26  ;;  %v1251_v19 = vadd.f32 %v1624_v39, %v1234_v4  ;;  %v1226_v5 = vadd.f32 %v1225_v3, %v1136_v41 }
0x13a9   :  { %v1249_v0 = vadd.f32 %v1624_v39, %v1226_v5  ;;  %1842 = vtanh.f32 %v1251_v19 }
0x13aa   :  { %v1831_v45 = vpop.eup %1830 }
0x13ab   :  { %1844 = vtanh.f32 %v1249_v0  ;;  %v1269_v31 = vmul.f32 %v1831_v45, %v1625_v60 }
0x13ac   :  { %v1833_v13 = vpop.eup %1832 }
0x13ad   :  { %v1267_v50 = vmul.f32 %v1833_v13, %v1625_v60  ;;  %v1281_v29 = vsel %vm136_vm0, %v1269_v31, 0.0 }
0x13ae   :  { %v1835_v49 = vpop.eup %1834 }
0x13af   :  { %v1275_v21 = vsel %vm136_vm0, %v1267_v50, 0.0  ;;  %v1270_v16 = vmul.f32 %v1835_v49, %v1625_v60 }
0x13b0   :  { %v1837_v33 = vpop.eup %1836  ;;  %1276 = vadd.xlane.f32.xlu0 %v1275_v21 }
0x13b1   :  { %v1268_v28 = vmul.f32 %v1837_v33, %v1625_v60  ;;  %v1284_v59 = vsel %vm136_vm0, %v1270_v16, 0.0 }
0x13b2   :  { %v1839_v56 = vpop.eup %1838 }
0x13b3   :  { %v1278_v53 = vsel %vm136_vm0, %v1268_v28, 0.0  ;;  %v1273_v36 = vmul.f32 %v1839_v56, %v1625_v60 }
0x13b4   :  { %v1841_v32 = vpop.eup %1840  ;;  %1279 = vadd.xlane.f32.xlu1 %v1278_v53  ;;  %1282 = vadd.xlane.f32.xlu0 %v1281_v29 }
0x13b5   :  { %v1271_v35 = vmul.f32 %v1841_v32, %v1625_v60  ;;  %v1293_v42 = vsel %vm136_vm0, %v1273_v36, 0.0 }
0x13b6   :  { %v1843_v44 = vpop.eup %1842 }
0x13b7   :  { %v1287_v52 = vsel %vm136_vm0, %v1271_v35, 0.0  ;;  %v1274_v11 = vmul.f32 %v1843_v44, %v1625_v60 }
0x13b8   :  { %v1845_v38 = vpop.eup %1844  ;;  %1288 = vadd.xlane.f32.xlu1 %v1287_v52  ;;  %1285 = vadd.xlane.f32.xlu0 %v1284_v59 }
0x13b9   :  { %v1272_v39 = vmul.f32 %v1845_v38, %v1625_v60  ;;  %v1296_v14 = vsel %vm136_vm0, %v1274_v11, 0.0 }
0x13bb   :  { %v1290_v8 = vsel %vm136_vm0, %v1272_v39, 0.0 }
0x13bc   :  { %1294 = vadd.xlane.f32.xlu1 %v1293_v42  ;;  %1291 = vadd.xlane.f32.xlu0 %v1290_v8 }
0x13c0   :  { %1297 = vadd.xlane.f32.xlu0 %v1296_v14 }
0x1439   :  { %v1277_v15 = vpop.xlane.xlu0 %1276 }
0x143a   :  { %v1306_v63 = vadd.f32 %v1626_v58, %v1277_v15 }
0x143d   :  { %v1280_v34 = vpop.xlane.xlu1 %1279  ;;  %v1283_v57 = vpop.xlane.xlu0 %1282 }
0x143e   :  { %v1307_v43 = vadd.f32 %v1626_v58, %v1280_v34  ;;  %v1308_v37 = vadd.f32 %v1626_v58, %v1283_v57 }
0x1440   :  { %v1314_v46 = vmax.f32 %v1306_v63, %v1307_v43 }
0x1441   :  { %v1289_v47 = vpop.xlane.xlu1 %1288  ;;  %v1286_v61 = vpop.xlane.xlu0 %1285 }
0x1442   :  { %v1315_v24 = vmax.f32 %v1314_v46, %v1308_v37  ;;  %v1309_v18 = vadd.f32 %v1626_v58, %v1286_v61  ;;  %v1310_v27 = vadd.f32 %v1626_v58, %v1289_v47  ;;  %v1730_v47 = vld [vmem:[%s2517_s10 + $0x8] sm:$0xff]   ;;  %v1731_v61 = vld [vmem:[%s2517_s10] sm:$0xff]  }
0x1444   :  { %v1316_v51 = vmax.f32 %v1315_v24, %v1309_v18 }
0x1445   :  { %v1295_v23 = vpop.xlane.xlu1 %1294  ;;  %v1292_v22 = vpop.xlane.xlu0 %1291 }
0x1446   :  { %v1317_v26 = vmax.f32 %v1316_v51, %v1310_v27  ;;  %v1311_v4 = vadd.f32 %v1626_v58, %v1292_v22  ;;  %v1312_v3 = vadd.f32 %v1626_v58, %v1295_v23 }
0x1448   :  { %v1318_v41 = vmax.f32 %v1317_v26, %v1311_v4 }
0x1449   :  { %v1298_v19 = vpop.xlane.xlu0 %1297 }
0x144a   :  { %v1319_v5 = vmax.f32 %v1318_v41, %v1312_v3  ;;  %v1313_v0 = vadd.f32 %v1626_v58, %v1298_v19 }
0x144c   :  { %v1320_v45 = vmax.f32 %v1319_v5, %v1313_v0 }
0x144e   :  { %v1321_v13 = vsub.f32 %v1306_v63, %v1320_v45  ;;  %v1334_v60 = vsub.f32 %v1307_v43, %v1320_v45  ;;  %v1347_v50 = vsub.f32 %v1308_v37, %v1320_v45  ;;  %v1360_v49 = vsub.f32 %v1309_v18, %v1320_v45 }
0x144f   :  { %v1373_v28 = vsub.f32 %v1310_v27, %v1320_v45  ;;  %v1386_v53 = vsub.f32 %v1311_v4, %v1320_v45  ;;  %v1399_v16 = vsub.f32 %v1312_v3, %v1320_v45  ;;  %v1412_v35 = vsub.f32 %v1313_v0, %v1320_v45 }
0x1450   :  { %v1322_v21 = vmul.f32 1.442695, %v1321_v13  ;;  %v1335_v31 = vmul.f32 1.442695, %v1334_v60  ;;  %v1348_v33 = vmul.f32 1.442695, %v1347_v50 }
0x1451   :  { %v1361_v56 = vmul.f32 1.442695, %v1360_v49  ;;  %v1374_v29 = vmul.f32 1.442695, %v1373_v28  ;;  %v1387_v32 = vmul.f32 1.442695, %v1386_v53 }
0x1452   :  { %1846 = vpow2.f32 %v1322_v21  ;;  %v1400_v44 = vmul.f32 1.442695, %v1399_v16  ;;  %v1413_v52 = vmul.f32 1.442695, %v1412_v35  ;;  %v1916_v43 = vmov 0.0  }
0x1453   :  { %1848 = vpow2.f32 %v1335_v31  ;;  %1676 = vmatprep.subr.bf16.mxu0 %v1916_v43  ;;  %1680 = vmatprep.mubr.msk.bf16.mxu0 %vm1917_vm4, %v1916_v43 }
0x1454   :  { %1850 = vpow2.f32 %v1348_v33  ;;  %1677 = vmatpush3.bf16.msra.mxu0 %v1730_v47 }
0x1455   :  { %1852 = vpow2.f32 %v1361_v56  ;;  %1678 = vmatprep.subr.bf16.mxu0 %v1916_v43 }
0x1456   :  { %1854 = vpow2.f32 %v1374_v29 }
0x1457   :  { %1856 = vpow2.f32 %v1387_v32 }
0x1458   :  { %1858 = vpow2.f32 %v1400_v44  ;;  %1679 = vmatpush3.bf16.msra.mxu0 %v1731_v61 }
0x1459   :  { %1860 = vpow2.f32 %v1413_v52  ;;  %1684 = vmatprep.subr.bf16.mxu0 %v1916_v43 }
0x145f   :  { %v1847_v59 = vpop.eup %1846 }
0x1460   :  { %v1849_v36 = vpop.eup %1848  ;;  %1327 = vperm.xlu1 %1702, %v1847_v59  }
0x1461   :  { %v1337_v38 = vadd.f32 %v1849_v36, %v1847_v59  ;;  %1340 = vperm.xlu0 %1703, %v1849_v36   ;;  %v1851_v39 = vpop.eup %1850 }
0x1462   :  { %v1853_v8 = vpop.eup %1852 }
0x1463   :  { %v1350_v42 = vadd.f32 %v1851_v39, %v1337_v38  ;;  %v1855_v14 = vpop.eup %1854 }
0x1464   :  { %1353 = vperm.xlu1 %1702, %v1851_v39   ;;  %v1857_v58 = vpop.eup %1856 }
0x1465   :  { %v1363_v11 = vadd.f32 %v1853_v8, %v1350_v42  ;;  %v1859_v57 = vpop.eup %1858 }
0x1466   :  { %v1861_v46 = vpop.eup %1860 }
0x1467   :  { %v1376_v15 = vadd.f32 %v1855_v14, %v1363_v11 }
0x1468   :  { %1366 = vperm.xlu1 %1702, %v1853_v8   ;;  %v1633_v8 = vld [vmem:[%s2518_s11] ss:$0 sm:$0xff] }
0x1469   :  { %v1389_v34 = vadd.f32 %v1857_v58, %v1376_v15 }
0x146b   :  { %v1402_v63 = vadd.f32 %v1859_v57, %v1389_v34 }
0x146c   :  { %1379 = vperm.xlu1 %1702, %v1855_v14  }
0x146d   :  { %v1415_v37 = vadd.f32 %v1861_v46, %v1402_v63 }
0x146f   :  { %1862 = vrcp.f32 %v1415_v37 }
0x1470   :  { %1392 = vperm.xlu1 %1702, %v1857_v58  }
0x1474   :  { %1405 = vperm.xlu1 %1702, %v1859_v57  }
0x1478   :  { %1418 = vperm.xlu1 %1702, %v1861_v46  }
0x147c   :  { %v1863_v24 = vpop.eup %1862 }
0x147d   :  { %1428 = vperm.xlu1 %1702, %v1863_v24  }
0x14db   :  { %v1328_v18 = vpop.permute.xlu1 %1327 }
0x14dc   :  { %v1341_v51 = vpop.permute.xlu0 %1340  ;;  %v1332_v26 = vmul.f32 %v1328_v18, %v2419_v40  ;;  %v1330_v0 = vmul.f32 %v1328_v18, %v2355_v62 }
0x14dd   :  { %v1345_v22 = vmul.f32 %v1341_v51, %v2421_v48  ;;  %v1343_v5 = vmul.f32 %v1341_v51, %v2352_v54 }
0x14df   :  { %v1354_v27 = vpop.permute.xlu1 %1353  ;;  %v1346_v41 = vadd.f32 %v1345_v22, %v1332_v26  ;;  %v1344_v40 = vadd.f32 %v1343_v5, %v1330_v0 }
0x14e0   :  { %v1358_v3 = vmul.f32 %v1354_v27, %v2427_v17  ;;  %v1356_v50 = vmul.f32 %v1354_v27, %v2368_v10 }
0x14e2   :  { %v1359_v13 = vadd.f32 %v1358_v3, %v1346_v41  ;;  %v1357_v33 = vadd.f32 %v1356_v50, %v1344_v40 }
0x14e3   :  { %v1367_v23 = vpop.permute.xlu1 %1366 }
0x14e4   :  { %v1371_v19 = vmul.f32 %v1367_v23, %v2429_v2  ;;  %v1369_v21 = vmul.f32 %v1367_v23, %v2364_v1 }
0x14e6   :  { %v1372_v49 = vadd.f32 %v1371_v19, %v1359_v13  ;;  %v1370_v28 = vadd.f32 %v1369_v21, %v1357_v33 }
0x14e7   :  { %v1380_v4 = vpop.permute.xlu1 %1379 }
0x14e8   :  { %v1384_v60 = vmul.f32 %v1380_v4, %v2435_v55  ;;  %v1382_v54 = vmul.f32 %v1380_v4, %v2372_v12  ;;  %v1732_v12 = vld [vmem:[%s2516_s9 + $0x8] sm:$0xff]  }
0x14ea   :  { %v1385_v31 = vadd.f32 %v1384_v60, %v1372_v49  ;;  %v1383_v29 = vadd.f32 %v1382_v54, %v1370_v28 }
0x14eb   :  { %v1393_v45 = vpop.permute.xlu1 %1392 }
0x14ec   :  { %v1397_v48 = vmul.f32 %v1393_v45, %v2437_v7  ;;  %v1395_v56 = vmul.f32 %v1393_v45, %v2366_v9 }
0x14ee   :  { %v1398_v62 = vadd.f32 %v1397_v48, %v1385_v31  ;;  %v1396_v1 = vadd.f32 %v1395_v56, %v1383_v29 }
0x14ef   :  { %v1406_v17 = vpop.permute.xlu1 %1405 }
0x14f0   :  { %v1410_v2 = vmul.f32 %v1406_v17, %v2442_v6  ;;  %v1408_v7 = vmul.f32 %v1406_v17, %v2406_v25  ;;  %v1733_v25 = vld [vmem:[%s2516_s9] sm:$0xff]  }
0x14f2   :  { %v1411_v53 = vadd.f32 %v1410_v2, %v1398_v62  ;;  %v1409_v6 = vadd.f32 %v1408_v7, %v1396_v1 }
0x14f3   :  { %v1419_v55 = vpop.permute.xlu1 %1418 }
0x14f4   :  { %v1423_v10 = vmul.f32 %v1419_v55, %v2444_v20  ;;  %v1421_v32 = vmul.f32 %v1419_v55, %v2408_v30 }
0x14f6   :  { %v1424_v16 = vadd.f32 %v1423_v10, %v1411_v53  ;;  %v1422_v52 = vadd.f32 %v1421_v32, %v1409_v6 }
0x14f8   :  { %v1429_v35 = vpop.permute.xlu1 %1428 }
0x14f9   :  { %v1432_v44 = vmul.f32 %v1429_v35, %v1424_v16  ;;  %v1431_v30 = vmul.f32 %v1429_v35, %v1422_v52 }
0x14fb   :  { %v1438_v9 = vpack.c.bf16 %v1432_v44, %v1432_v44  ;;  %v1433_v20 = vpack.c.bf16 %v1431_v30, %v1431_v30 }
0x14fd   :  { %1681 = vmatmul.mubr.msk.bf16.vlgmr.msra.gmra.mxu0 %vm136_vm0, %v1438_v9 }
0x14fe   :  { %1685 = vmatpush3.bf16.msra.mxu0 %v1732_v12  ;;  %1688 = vmatprep.mubr.msk.bf16.mxu0 %vm1917_vm4, %v1916_v43 }
0x14ff   :  { %1686 = vmatprep.subr.bf16.mxu0 %v1916_v43 }
0x1502   :  { %1687 = vmatpush3.bf16.msra.mxu0 %v1733_v25 }
0x1505   :  { %1689 = vmatmul.mubr.msk.bf16.vlgmr.msra.gmra.mxu0 %vm136_vm0, %v1433_v20 }
0x15bd   :  { %v1492_v59 = vpop.f32.mrf.mxu0 }
0x15bf   :  { %v1682_v36 = vpop.f32.mrf.mxu0 }
0x15c1   :  { %v1495_v38 = vpop.f32.mrf.mxu0 }
0x15c3   :  { %v1683_v39 = vpop.f32.mrf.mxu0 }
0x15c5   :  { %v1547_v42 = vpop.f32.mrf.mxu0 }
0x15c6   :  { %v1548_v11 = vadd.f32 %v1547_v42, %v1492_v59 }
0x15c7   :  { %v1690_v14 = vpop.f32.mrf.mxu0 }
0x15c8   :  { %v1560_v15 = vadd.f32 %v1633_v8, %v1548_v11 }
0x15c9   :  { %v1550_v58 = vpop.f32.mrf.mxu0 }
0x15ca   :  { %1562 = vst.msk [vmem:[%s2519_s12] sm:$0xff] %vm1561_vm5, %v1560_v15 }
0x15cb   :  { %v1691_v34 = vpop.f32.mrf.mxu0 }
0x15cc   :  { %1567 = vsyncpa [#allocation7], 1 }
0x15cd   :  { %1568 = vsyncpa [#allocation9], 1 }

</bundles_post_ra>
